<compile_context>
chip_gen: v6e
topology: v6e:2x2x1
jax: 0.10.0
libtpu: 0.0.40
codegen_flags: <defaults>
</compile_context>

<pallas_src>
import functools

import jax
import jax.numpy as jnp
from jax import lax
from jax.experimental import pallas as pl
from jax.experimental.pallas import tpu as pltpu

_IOU_EPS = 1e-7      # eps used inside ultralytics bbox_iou
_IN_GTS_EPS = 1e-9   # eps used by select_candidates_in_gts (its own default)
_TIE_BIAS = 1e-12    # per-lane tiebreaker unit for top-k selection


def _pow(x, p):
    # torch .pow with compile-time exponent; use integer_pow when exponent is integral.
    if float(p).is_integer():
        return lax.integer_pow(x, int(p))
    return jnp.power(x, jnp.float32(p))


def _atan(x):
    # Polynomial arctan approximation (Eigen-style, |err| ~ 1e-6).
    # TODO(synk): Mosaic has no native atan lowering; this stands in for torch.atan in CIoU.
    ax = jnp.abs(x)
    inv = ax > 1.0
    z = jnp.where(inv, pl.reciprocal(jnp.maximum(ax, 1e-30), approx=True), ax)
    z2 = z * z
    p = jnp.float32(-0.01172120)
    p = p * z2 + jnp.float32(0.05265332)
    p = p * z2 + jnp.float32(-0.11643287)
    p = p * z2 + jnp.float32(0.19354346)
    p = p * z2 + jnp.float32(-0.33262347)
    p = p * z2 + jnp.float32(0.99997726)
    r = z * p
    r = jnp.where(inv, jnp.float32(jnp.pi / 2) - r, r)
    return jnp.where(x < 0.0, -r, r)


def _tal_kernel(pred_cls_t_ref, pred_bbox_t_ref, anchors_t_ref, gt_cls_ref,
                gt_bbox_ref, gt_bbox_t_ref, mask_gt_ref,
                tscores_t_ref, tbbox_t_ref, fg_ref,
                *, top_k, alpha, beta, eps):
    f32 = jnp.float32
    C = pred_cls_t_ref.shape[1]
    A = pred_cls_t_ref.shape[2]
    M = gt_bbox_ref.shape[1]

    pct = pred_cls_t_ref[0]       # (C, A) bfloat16
    pbt = pred_bbox_t_ref[0]      # (4, A) f32
    apt = anchors_t_ref[...]      # (2, A) f32
    gc = gt_cls_ref[0]            # (M, 1) int32
    gb = gt_bbox_ref[0]           # (M, 4) f32
    gbt = gt_bbox_t_ref[0]        # (4, M) f32
    mg = mask_gt_ref[0]           # (M, 1) f32

    ap_x, ap_y = apt[0:1, :], apt[1:2, :]
    gb_x1, gb_y1, gb_x2, gb_y2 = gb[:, 0:1], gb[:, 1:2], gb[:, 2:3], gb[:, 3:4]

    # ---- select_candidates_in_gts: anchor center inside gt box -> (M, A) ----
    min_delta = jnp.minimum(jnp.minimum(ap_x - gb_x1, ap_y - gb_y1),
                            jnp.minimum(gb_x2 - ap_x, gb_y2 - ap_y))
    mask_in_gts = (min_delta > _IN_GTS_EPS).astype(f32)
    mask = mask_in_gts * mg                                        # (M, A)

    # ---- bbox_scores: gather pred_cls at gt class as one-hot matmul (MXU, bf16 in) ----
    cls_iota = lax.broadcasted_iota(jnp.int32, (M, C), 1)
    cls_onehot = (cls_iota == gc).astype(f32)                      # (M, C), exact
    bbox_scores = jnp.dot(cls_onehot.astype(jnp.bfloat16), pct,
                          preferred_element_type=f32)              # (M, A)
    bbox_scores = bbox_scores * mask

    # ---- CIoU(gt, pred) -> overlaps (M, A) (divides -> approx reciprocal on EUP) ----
    pb_x1, pb_y1, pb_x2, pb_y2 = pbt[0:1, :], pbt[1:2, :], pbt[2:3, :], pbt[3:4, :]
    w1 = gb_x2 - gb_x1
    h1 = gb_y2 - gb_y1 + _IOU_EPS
    w2 = pb_x2 - pb_x1
    h2 = pb_y2 - pb_y1 + _IOU_EPS
    inter = (jnp.maximum(jnp.minimum(gb_x2, pb_x2) - jnp.maximum(gb_x1, pb_x1), 0.0) *
             jnp.maximum(jnp.minimum(gb_y2, pb_y2) - jnp.maximum(gb_y1, pb_y1), 0.0))
    union = w1 * h1 + w2 * h2 - inter + _IOU_EPS
    iou = inter * pl.reciprocal(union, approx=True)
    cw = jnp.maximum(gb_x2, pb_x2) - jnp.minimum(gb_x1, pb_x1)
    ch = jnp.maximum(gb_y2, pb_y2) - jnp.minimum(gb_y1, pb_y1)
    c2 = cw * cw + ch * ch + _IOU_EPS
    rho2 = ((pb_x1 + pb_x2 - gb_x1 - gb_x2) ** 2 +
            (pb_y1 + pb_y2 - gb_y1 - gb_y2) ** 2) * 0.25
    v = (4.0 / (jnp.pi ** 2)) * (_atan(w2 * pl.reciprocal(h2, approx=True)) -
                                 _atan(w1 * pl.reciprocal(h1, approx=True))) ** 2
    a_ciou = v * pl.reciprocal(v - iou + (1.0 + _IOU_EPS), approx=True)
    ciou = iou - (rho2 * pl.reciprocal(c2, approx=True) + v * a_ciou)
    overlaps = jnp.where(mask > 0.0, jnp.maximum(ciou, 0.0), 0.0)  # (M, A)

    # ---- alignment metric ----
    align = _pow(bbox_scores, alpha) * _pow(overlaps, beta)        # (M, A)

    # ---- select_top_k_candidates: iterative arg-max, one lane reduction / iter ----
    # Strictly decreasing per-lane bias resolves the realistic tie (metric == 0) to the
    # lowest anchor index, so a single max + compare replaces max + first-index-of-max.
    iota_a_f = lax.broadcasted_iota(jnp.int32, (M, A), 1).astype(f32)
    work0 = align - iota_a_f * f32(_TIE_BIAS)

    def body(_, carry):
        sel, work = carry
        row_max = jnp.max(work, axis=1, keepdims=True)
        pick = work >= row_max
        sel = jnp.maximum(sel, pick.astype(f32))
        work = jnp.where(pick, -jnp.inf, work)
        return sel, work

    sel, _ = lax.fori_loop(0, top_k, body,
                           (jnp.zeros((M, A), dtype=f32), work0), unroll=True)
    mask_pos = sel * mask_in_gts * mg                              # (M, A)

    # ---- select_highest_overlaps (small sublane reductions over M) ----
    iota_m = lax.broadcasted_iota(jnp.int32, (M, A), 0)
    fg_count = jnp.sum(mask_pos, axis=0, keepdims=True)            # (1, A)
    col_max_ov = jnp.max(overlaps, axis=0, keepdims=True)
    first_ov = jnp.min(jnp.where(overlaps >= col_max_ov, iota_m, M),
                       axis=0, keepdims=True)
    is_max_ov = (iota_m == first_ov).astype(f32)
    mask_pos = jnp.where(fg_count > 1.0, is_max_ov, mask_pos)
    fg_row = jnp.sum(mask_pos, axis=0, keepdims=True)              # (1, A)

    col_max_pos = jnp.max(mask_pos, axis=0, keepdims=True)
    first_pos = jnp.min(jnp.where(mask_pos >= col_max_pos, iota_m, M),
                        axis=0, keepdims=True)
    assign_oh = (iota_m == first_pos).astype(f32)                  # (M, A) one-hot over gts

    # ---- score normalization ----
    align_p = align * mask_pos
    pos_align = jnp.max(align_p, axis=1, keepdims=True)            # (M, 1)
    pos_ov = jnp.max(overlaps * mask_pos, axis=1, keepdims=True)   # (M, 1)
    norm_row = jnp.max(align_p * (pos_ov * pl.reciprocal(pos_align + eps, approx=True)),
                       axis=0, keepdims=True)                      # (1, A)

    # ---- get_targets, lane-dense: outputs are (C, A) / (4, A) / (1, A) ----
    label_row = jnp.sum(gc.astype(f32) * assign_oh, axis=0, keepdims=True)  # (1, A) exact
    label_row_i = label_row.astype(jnp.int32)
    iota_c = lax.broadcasted_iota(jnp.int32, (C, A), 0)
    cls_hit = (iota_c == label_row_i).astype(f32)                  # (C, A)
    fg_pos = (fg_row > 0.0).astype(f32)                            # (1, A)

    tscores_t_ref[0] = cls_hit * (fg_pos * norm_row)               # (C, A)
    tbbox_t_ref[0] = jnp.dot(gbt, assign_oh, preferred_element_type=f32)   # (4, A)
    fg_ref[0] = fg_row                                             # (1, A)


class TaskAlignedAssignerPallas:
    def __init__(self, top_k=13, num_classes=80, alpha=1.0, beta=6.0, eps=1e-9):
        self.top_k, self.num_classes = top_k, num_classes
        self.alpha, self.beta, self.eps = alpha, beta, eps
        self.bg_idx = num_classes

    def __call__(self, pred_cls, pred_bbox, anchor_points, gt_cls, gt_bbox, mask_gt):
        bs, A, C = pred_cls.shape
        M = gt_bbox.shape[1]
        assert C == self.num_classes
        # TODO(synk): the torch num_max_boxes == 0 early-return branch is not handled here
        # (static shapes; callers pass M >= 1 padded gt slots).

        # bf16 only for the big MXU operand; everything elementwise stays f32.
        pred_cls_t = jnp.transpose(pred_cls.astype(jnp.bfloat16), (0, 2, 1))     # (bs, C, A)
        pred_bbox_t = jnp.transpose(pred_bbox.astype(jnp.float32), (0, 2, 1))    # (bs, 4, A)
        anchors_t = jnp.transpose(anchor_points.astype(jnp.float32), (1, 0))     # (2, A)
        gt_cls_i = gt_cls.astype(jnp.int32).reshape(bs, M, 1)
        gt_bbox_f = gt_bbox.astype(jnp.float32)                                  # (bs, M, 4)
        gt_bbox_t = jnp.transpose(gt_bbox_f, (0, 2, 1))                          # (bs, 4, M)
        mask_gt_f = mask_gt.astype(jnp.float32).reshape(bs, M, 1)

        kernel = functools.partial(_tal_kernel, top_k=self.top_k,
                                   alpha=self.alpha, beta=self.beta, eps=self.eps)
        # Lane-dense (anchor-on-lane) outputs; transposed back to torch layout below.
        out_shapes = (
            jax.ShapeDtypeStruct((bs, C, A), jnp.float32),   # target_scores^T
            jax.ShapeDtypeStruct((bs, 4, A), jnp.float32),   # target_bbox^T
            jax.ShapeDtypeStruct((bs, 1, A), jnp.float32),   # fg mask (float, >0 -> bool)
        )
        tscores_t, tbbox_t, fg = pl.pallas_call(
            kernel,
            out_shape=out_shapes,
            grid_spec=pltpu.PrefetchScalarGridSpec(
                num_scalar_prefetch=0,
                grid=(bs,),
                in_specs=[
                    pl.BlockSpec((1, C, A), lambda b: (b, 0, 0)),   # pred_cls^T (bf16)
                    pl.BlockSpec((1, 4, A), lambda b: (b, 0, 0)),   # pred_bbox^T
                    pl.BlockSpec((2, A), lambda b: (0, 0)),         # anchor_points^T
                    pl.BlockSpec((1, M, 1), lambda b: (b, 0, 0)),   # gt_cls
                    pl.BlockSpec((1, M, 4), lambda b: (b, 0, 0)),   # gt_bbox
                    pl.BlockSpec((1, 4, M), lambda b: (b, 0, 0)),   # gt_bbox^T
                    pl.BlockSpec((1, M, 1), lambda b: (b, 0, 0)),   # mask_gt
                ],
                out_specs=[
                    pl.BlockSpec((1, C, A), lambda b: (b, 0, 0)),
                    pl.BlockSpec((1, 4, A), lambda b: (b, 0, 0)),
                    pl.BlockSpec((1, 1, A), lambda b: (b, 0, 0)),
                ],
            ),
            compiler_params=pltpu.CompilerParams(
                dimension_semantics=("parallel",),
                vmem_limit_bytes=32 * 1024 * 1024),
        )(pred_cls_t, pred_bbox_t, anchors_t, gt_cls_i, gt_bbox_f, gt_bbox_t, mask_gt_f)

        target_scores = jnp.transpose(tscores_t, (0, 2, 1))   # (bs, A, C)
        target_bbox = jnp.transpose(tbbox_t, (0, 2, 1))       # (bs, A, 4)
        fg_mask = fg[:, 0, :] > 0.0                            # (bs, A) bool
        return target_scores, target_bbox, fg_mask


if __name__ == "__main__":
    key = jax.random.PRNGKey(0)
    bs, H, W, C, M = 2, 16, 16, 16, 8
    A = H * W
    k1, k2, k3, k4, k5 = jax.random.split(key, 5)

    # anchor centers of a 16x16 feature map, stride 1
    ys, xs = jnp.meshgrid(jnp.arange(H, dtype=jnp.float32) + 0.5,
                          jnp.arange(W, dtype=jnp.float32) + 0.5, indexing="ij")
    anchor_points = jnp.stack([xs.reshape(-1), ys.reshape(-1)], axis=-1)          # (A, 2)

    pred_cls = jax.nn.sigmoid(jax.random.normal(k1, (bs, A, C), jnp.float32))     # (bs, A, C)
    off = jnp.abs(jax.random.normal(k2, (bs, A, 4), jnp.float32)) * 2.0 + 0.5
    ax, ay = anchor_points[:, 0], anchor_points[:, 1]
    pred_bbox = jnp.stack([ax[None] - off[..., 0], ay[None] - off[..., 1],
                           ax[None] + off[..., 2], ay[None] + off[..., 3]], axis=-1)  # xyxy

    cxy = jax.random.uniform(k3, (bs, M, 2), jnp.float32, 3.0, 13.0)
    wh = jax.random.uniform(k4, (bs, M, 2), jnp.float32, 2.0, 6.0)
    gt_bbox = jnp.concatenate([cxy - wh / 2.0, cxy + wh / 2.0], axis=-1)          # (bs, M, 4)
    gt_cls = jax.random.randint(k5, (bs, M, 1), 0, C).astype(jnp.float32)         # (bs, M, 1)
    mask_gt = (jnp.arange(M)[None, :, None] <
               jnp.array([5, 3])[:, None, None]).astype(jnp.float32)              # (bs, M, 1)

    assigner = TaskAlignedAssignerPallas(top_k=13, num_classes=C,
                                         alpha=1.0, beta=6.0, eps=1e-9)
    target_scores, target_bbox, fg_mask = assigner(
        pred_cls, pred_bbox, anchor_points, gt_cls, gt_bbox, mask_gt)
    jax.block_until_ready((target_scores, target_bbox, fg_mask))

    assert target_scores.shape == (bs, A, C)
    assert target_bbox.shape == (bs, A, 4)
    assert fg_mask.shape == (bs, A) and fg_mask.dtype == jnp.bool_
    assert bool(jnp.all(jnp.isfinite(target_scores)))
    assert bool(jnp.all(jnp.isfinite(target_bbox)))
    print("KERNEL_OK")
</pallas_src>

<mosaic_0001>
module attributes {stable_mosaic.version = 11 : i64} {
  func.func @_tal_kernel(%arg0: i32, %arg1: memref<1x16x256xbf16, #tpu.memory_space<vmem>>, %arg2: memref<1x4x256xf32, #tpu.memory_space<vmem>>, %arg3: memref<2x256xf32, #tpu.memory_space<vmem>>, %arg4: memref<1x8x1xi32, #tpu.memory_space<vmem>>, %arg5: memref<1x8x4xf32, #tpu.memory_space<vmem>>, %arg6: memref<1x4x8xf32, #tpu.memory_space<vmem>>, %arg7: memref<1x8x1xf32, #tpu.memory_space<vmem>>, %arg8: memref<1x16x256xf32, #tpu.memory_space<vmem>>, %arg9: memref<1x4x256xf32, #tpu.memory_space<vmem>>, %arg10: memref<1x1x256xf32, #tpu.memory_space<vmem>>) attributes {dimension_semantics = [#tpu.dimension_semantics<parallel>], iteration_bounds = array<i64: 2>, scalar_prefetch = 0 : i64, scratch_operands = 0 : i64, tpu.core_type = #tpu.core_type<tc>, window_params = [{transform_indices = @transform_0, window_bounds = array<i64: 1, 16, 256>}, {transform_indices = @transform_1, window_bounds = array<i64: 1, 4, 256>}, {pipeline_mode = #tpu.pipeline_mode<synchronous>, transform_indices = @transform_2, window_bounds = array<i64: 2, 256>}, {transform_indices = @transform_3, window_bounds = array<i64: 1, 8, 1>}, {transform_indices = @transform_4, window_bounds = array<i64: 1, 8, 4>}, {transform_indices = @transform_5, window_bounds = array<i64: 1, 4, 8>}, {transform_indices = @transform_6, window_bounds = array<i64: 1, 8, 1>}, {transform_indices = @transform_7, window_bounds = array<i64: 1, 16, 256>}, {transform_indices = @transform_8, window_bounds = array<i64: 1, 4, 256>}, {transform_indices = @transform_9, window_bounds = array<i64: 1, 1, 256>}]} {
    %c0 = arith.constant 0 : index
    %c0_0 = arith.constant 0 : index
    %c0_1 = arith.constant 0 : index
    %0 = vector.load %arg1[%c0, %c0_0, %c0_1] : memref<1x16x256xbf16, #tpu.memory_space<vmem>>, vector<1x16x256xbf16>
    %1 = vector.shape_cast %0 : vector<1x16x256xbf16> to vector<16x256xbf16>
    %c0_2 = arith.constant 0 : index
    %c0_3 = arith.constant 0 : index
    %c0_4 = arith.constant 0 : index
    %2 = vector.load %arg2[%c0_2, %c0_3, %c0_4] : memref<1x4x256xf32, #tpu.memory_space<vmem>>, vector<1x4x256xf32>
    %3 = vector.shape_cast %2 : vector<1x4x256xf32> to vector<4x256xf32>
    %c0_5 = arith.constant 0 : index
    %c0_6 = arith.constant 0 : index
    %4 = vector.load %arg3[%c0_5, %c0_6] : memref<2x256xf32, #tpu.memory_space<vmem>>, vector<2x256xf32>
    %c0_7 = arith.constant 0 : index
    %c0_8 = arith.constant 0 : index
    %c0_9 = arith.constant 0 : index
    %5 = vector.load %arg4[%c0_7, %c0_8, %c0_9] : memref<1x8x1xi32, #tpu.memory_space<vmem>>, vector<1x8x1xi32>
    %6 = vector.shape_cast %5 : vector<1x8x1xi32> to vector<8x1xi32>
    %c0_10 = arith.constant 0 : index
    %c0_11 = arith.constant 0 : index
    %c0_12 = arith.constant 0 : index
    %7 = vector.load %arg5[%c0_10, %c0_11, %c0_12] : memref<1x8x4xf32, #tpu.memory_space<vmem>>, vector<1x8x4xf32>
    %8 = vector.shape_cast %7 : vector<1x8x4xf32> to vector<8x4xf32>
    %c0_13 = arith.constant 0 : index
    %c0_14 = arith.constant 0 : index
    %c0_15 = arith.constant 0 : index
    %9 = vector.load %arg6[%c0_13, %c0_14, %c0_15] : memref<1x4x8xf32, #tpu.memory_space<vmem>>, vector<1x4x8xf32>
    %10 = vector.shape_cast %9 : vector<1x4x8xf32> to vector<4x8xf32>
    %c0_16 = arith.constant 0 : index
    %c0_17 = arith.constant 0 : index
    %c0_18 = arith.constant 0 : index
    %11 = vector.load %arg7[%c0_16, %c0_17, %c0_18] : memref<1x8x1xf32, #tpu.memory_space<vmem>>, vector<1x8x1xf32>
    %12 = vector.shape_cast %11 : vector<1x8x1xf32> to vector<8x1xf32>
    %13 = vector.extract_strided_slice %4 {offsets = [0, 0], sizes = [1, 256], strides = [1, 1]} : vector<2x256xf32> to vector<1x256xf32>
    %14 = vector.extract_strided_slice %4 {offsets = [1, 0], sizes = [1, 256], strides = [1, 1]} : vector<2x256xf32> to vector<1x256xf32>
    %15 = vector.extract_strided_slice %8 {offsets = [0, 0], sizes = [8, 1], strides = [1, 1]} : vector<8x4xf32> to vector<8x1xf32>
    %16 = vector.extract_strided_slice %8 {offsets = [0, 1], sizes = [8, 1], strides = [1, 1]} : vector<8x4xf32> to vector<8x1xf32>
    %17 = vector.extract_strided_slice %8 {offsets = [0, 2], sizes = [8, 1], strides = [1, 1]} : vector<8x4xf32> to vector<8x1xf32>
    %18 = vector.extract_strided_slice %8 {offsets = [0, 3], sizes = [8, 1], strides = [1, 1]} : vector<8x4xf32> to vector<8x1xf32>
    %19 = vector.broadcast %13 : vector<1x256xf32> to vector<8x256xf32>
    %20 = vector.broadcast %15 : vector<8x1xf32> to vector<8x256xf32>
    %21 = arith.subf %19, %20 : vector<8x256xf32>
    %22 = vector.broadcast %14 : vector<1x256xf32> to vector<8x256xf32>
    %23 = vector.broadcast %16 : vector<8x1xf32> to vector<8x256xf32>
    %24 = arith.subf %22, %23 : vector<8x256xf32>
    %25 = arith.minimumf %21, %24 : vector<8x256xf32>
    %26 = vector.broadcast %17 : vector<8x1xf32> to vector<8x256xf32>
    %27 = vector.broadcast %13 : vector<1x256xf32> to vector<8x256xf32>
    %28 = arith.subf %26, %27 : vector<8x256xf32>
    %29 = vector.broadcast %18 : vector<8x1xf32> to vector<8x256xf32>
    %30 = vector.broadcast %14 : vector<1x256xf32> to vector<8x256xf32>
    %31 = arith.subf %29, %30 : vector<8x256xf32>
    %32 = arith.minimumf %28, %31 : vector<8x256xf32>
    %33 = arith.minimumf %25, %32 : vector<8x256xf32>
    %cst = arith.constant 9.99999971E-10 : f32
    %34 = vector.broadcast %cst : f32 to vector<8x256xf32>
    %35 = arith.cmpf ogt, %33, %34 : vector<8x256xf32>
    %36 = arith.extui %35 : vector<8x256xi1> to vector<8x256xi32>
    %37 = arith.sitofp %36 : vector<8x256xi32> to vector<8x256xf32>
    %38 = vector.broadcast %12 : vector<8x1xf32> to vector<8x256xf32>
    %39 = arith.mulf %37, %38 : vector<8x256xf32>
    %40 = tpu.iota {dimensions = array<i32: 1>} : vector<8x16xi32>
    %41 = vector.broadcast %6 : vector<8x1xi32> to vector<8x16xi32>
    %42 = arith.cmpi eq, %40, %41 : vector<8x16xi32>
    %43 = arith.extui %42 : vector<8x16xi1> to vector<8x16xi32>
    %44 = arith.sitofp %43 : vector<8x16xi32> to vector<8x16xf32>
    %45 = arith.truncf %44 : vector<8x16xf32> to vector<8x16xbf16>
    %cst_19 = arith.constant dense<0.000000e+00> : vector<8x256xf32>
    %46 = tpu.matmul %45, %1, %cst_19 {dimension_numbers = #tpu.dot_dimension_numbers<[1], [0], [0], [1], [0, 0, 1, 1], [], []>} : vector<8x16xbf16>, vector<16x256xbf16>, vector<8x256xf32> -> vector<8x256xf32>
    %47 = arith.mulf %46, %39 : vector<8x256xf32>
    %48 = vector.extract_strided_slice %3 {offsets = [0, 0], sizes = [1, 256], strides = [1, 1]} : vector<4x256xf32> to vector<1x256xf32>
    %49 = vector.extract_strided_slice %3 {offsets = [1, 0], sizes = [1, 256], strides = [1, 1]} : vector<4x256xf32> to vector<1x256xf32>
    %50 = vector.extract_strided_slice %3 {offsets = [2, 0], sizes = [1, 256], strides = [1, 1]} : vector<4x256xf32> to vector<1x256xf32>
    %51 = vector.extract_strided_slice %3 {offsets = [3, 0], sizes = [1, 256], strides = [1, 1]} : vector<4x256xf32> to vector<1x256xf32>
    %52 = arith.subf %17, %15 : vector<8x1xf32>
    %53 = arith.subf %18, %16 : vector<8x1xf32>
    %cst_20 = arith.constant 1.000000e-07 : f32
    %54 = vector.broadcast %cst_20 : f32 to vector<8x1xf32>
    %55 = arith.addf %53, %54 : vector<8x1xf32>
    %56 = arith.subf %50, %48 : vector<1x256xf32>
    %57 = arith.subf %51, %49 : vector<1x256xf32>
    %cst_21 = arith.constant 1.000000e-07 : f32
    %58 = vector.broadcast %cst_21 : f32 to vector<1x256xf32>
    %59 = arith.addf %57, %58 : vector<1x256xf32>
    %60 = vector.broadcast %17 : vector<8x1xf32> to vector<8x256xf32>
    %61 = vector.broadcast %50 : vector<1x256xf32> to vector<8x256xf32>
    %62 = arith.minimumf %60, %61 : vector<8x256xf32>
    %63 = vector.broadcast %15 : vector<8x1xf32> to vector<8x256xf32>
    %64 = vector.broadcast %48 : vector<1x256xf32> to vector<8x256xf32>
    %65 = arith.maximumf %63, %64 : vector<8x256xf32>
    %66 = arith.subf %62, %65 : vector<8x256xf32>
    %cst_22 = arith.constant 0.000000e+00 : f32
    %67 = vector.broadcast %cst_22 : f32 to vector<8x256xf32>
    %68 = arith.maximumf %66, %67 : vector<8x256xf32>
    %69 = vector.broadcast %18 : vector<8x1xf32> to vector<8x256xf32>
    %70 = vector.broadcast %51 : vector<1x256xf32> to vector<8x256xf32>
    %71 = arith.minimumf %69, %70 : vector<8x256xf32>
    %72 = vector.broadcast %16 : vector<8x1xf32> to vector<8x256xf32>
    %73 = vector.broadcast %49 : vector<1x256xf32> to vector<8x256xf32>
    %74 = arith.maximumf %72, %73 : vector<8x256xf32>
    %75 = arith.subf %71, %74 : vector<8x256xf32>
    %cst_23 = arith.constant 0.000000e+00 : f32
    %76 = vector.broadcast %cst_23 : f32 to vector<8x256xf32>
    %77 = arith.maximumf %75, %76 : vector<8x256xf32>
    %78 = arith.mulf %68, %77 : vector<8x256xf32>
    %79 = arith.mulf %52, %55 : vector<8x1xf32>
    %80 = arith.mulf %56, %59 : vector<1x256xf32>
    %81 = vector.broadcast %79 : vector<8x1xf32> to vector<8x256xf32>
    %82 = vector.broadcast %80 : vector<1x256xf32> to vector<8x256xf32>
    %83 = arith.addf %81, %82 : vector<8x256xf32>
    %84 = arith.subf %83, %78 : vector<8x256xf32>
    %cst_24 = arith.constant 1.000000e-07 : f32
    %85 = vector.broadcast %cst_24 : f32 to vector<8x256xf32>
    %86 = arith.addf %84, %85 : vector<8x256xf32>
    %87 = tpu.reciprocal %86 {approx = true} : vector<8x256xf32> -> vector<8x256xf32>
    %88 = arith.mulf %78, %87 : vector<8x256xf32>
    %89 = vector.broadcast %17 : vector<8x1xf32> to vector<8x256xf32>
    %90 = vector.broadcast %50 : vector<1x256xf32> to vector<8x256xf32>
    %91 = arith.maximumf %89, %90 : vector<8x256xf32>
    %92 = vector.broadcast %15 : vector<8x1xf32> to vector<8x256xf32>
    %93 = vector.broadcast %48 : vector<1x256xf32> to vector<8x256xf32>
    %94 = arith.minimumf %92, %93 : vector<8x256xf32>
    %95 = arith.subf %91, %94 : vector<8x256xf32>
    %96 = vector.broadcast %18 : vector<8x1xf32> to vector<8x256xf32>
    %97 = vector.broadcast %51 : vector<1x256xf32> to vector<8x256xf32>
    %98 = arith.maximumf %96, %97 : vector<8x256xf32>
    %99 = vector.broadcast %16 : vector<8x1xf32> to vector<8x256xf32>
    %100 = vector.broadcast %49 : vector<1x256xf32> to vector<8x256xf32>
    %101 = arith.minimumf %99, %100 : vector<8x256xf32>
    %102 = arith.subf %98, %101 : vector<8x256xf32>
    %103 = arith.mulf %95, %95 : vector<8x256xf32>
    %104 = arith.mulf %102, %102 : vector<8x256xf32>
    %105 = arith.addf %103, %104 : vector<8x256xf32>
    %cst_25 = arith.constant 1.000000e-07 : f32
    %106 = vector.broadcast %cst_25 : f32 to vector<8x256xf32>
    %107 = arith.addf %105, %106 : vector<8x256xf32>
    %108 = arith.addf %48, %50 : vector<1x256xf32>
    %109 = vector.broadcast %108 : vector<1x256xf32> to vector<8x256xf32>
    %110 = vector.broadcast %15 : vector<8x1xf32> to vector<8x256xf32>
    %111 = arith.subf %109, %110 : vector<8x256xf32>
    %112 = vector.broadcast %17 : vector<8x1xf32> to vector<8x256xf32>
    %113 = arith.subf %111, %112 : vector<8x256xf32>
    %114 = arith.mulf %113, %113 : vector<8x256xf32>
    %115 = arith.addf %49, %51 : vector<1x256xf32>
    %116 = vector.broadcast %115 : vector<1x256xf32> to vector<8x256xf32>
    %117 = vector.broadcast %16 : vector<8x1xf32> to vector<8x256xf32>
    %118 = arith.subf %116, %117 : vector<8x256xf32>
    %119 = vector.broadcast %18 : vector<8x1xf32> to vector<8x256xf32>
    %120 = arith.subf %118, %119 : vector<8x256xf32>
    %121 = arith.mulf %120, %120 : vector<8x256xf32>
    %122 = arith.addf %114, %121 : vector<8x256xf32>
    %cst_26 = arith.constant 2.500000e-01 : f32
    %123 = vector.broadcast %cst_26 : f32 to vector<8x256xf32>
    %124 = arith.mulf %122, %123 : vector<8x256xf32>
    %125 = tpu.reciprocal %59 {approx = true} : vector<1x256xf32> -> vector<1x256xf32>
    %126 = arith.mulf %56, %125 : vector<1x256xf32>
    %127 = math.absf %126 : vector<1x256xf32>
    %cst_27 = arith.constant 1.000000e+00 : f32
    %128 = vector.broadcast %cst_27 : f32 to vector<1x256xf32>
    %129 = arith.cmpf ogt, %127, %128 : vector<1x256xf32>
    %cst_28 = arith.constant 1.000000e-30 : f32
    %130 = vector.broadcast %cst_28 : f32 to vector<1x256xf32>
    %131 = arith.maximumf %127, %130 : vector<1x256xf32>
    %132 = tpu.reciprocal %131 {approx = true} : vector<1x256xf32> -> vector<1x256xf32>
    %133 = arith.select %129, %132, %127 : vector<1x256xi1>, vector<1x256xf32>
    %134 = arith.mulf %133, %133 : vector<1x256xf32>
    %cst_29 = arith.constant -1.172120e-02 : f32
    %135 = vector.broadcast %cst_29 : f32 to vector<1x256xf32>
    %136 = arith.mulf %135, %134 : vector<1x256xf32>
    %cst_30 = arith.constant 0.0526533201 : f32
    %137 = vector.broadcast %cst_30 : f32 to vector<1x256xf32>
    %138 = arith.addf %136, %137 : vector<1x256xf32>
    %139 = arith.mulf %138, %134 : vector<1x256xf32>
    %cst_31 = arith.constant -0.116432868 : f32
    %140 = vector.broadcast %cst_31 : f32 to vector<1x256xf32>
    %141 = arith.addf %139, %140 : vector<1x256xf32>
    %142 = arith.mulf %141, %134 : vector<1x256xf32>
    %cst_32 = arith.constant 0.193543464 : f32
    %143 = vector.broadcast %cst_32 : f32 to vector<1x256xf32>
    %144 = arith.addf %142, %143 : vector<1x256xf32>
    %145 = arith.mulf %144, %134 : vector<1x256xf32>
    %cst_33 = arith.constant -0.332623482 : f32
    %146 = vector.broadcast %cst_33 : f32 to vector<1x256xf32>
    %147 = arith.addf %145, %146 : vector<1x256xf32>
    %148 = arith.mulf %147, %134 : vector<1x256xf32>
    %cst_34 = arith.constant 0.999977231 : f32
    %149 = vector.broadcast %cst_34 : f32 to vector<1x256xf32>
    %150 = arith.addf %148, %149 : vector<1x256xf32>
    %151 = arith.mulf %133, %150 : vector<1x256xf32>
    %cst_35 = arith.constant 1.57079637 : f32
    %152 = vector.broadcast %cst_35 : f32 to vector<1x256xf32>
    %153 = arith.subf %152, %151 : vector<1x256xf32>
    %154 = arith.select %129, %153, %151 : vector<1x256xi1>, vector<1x256xf32>
    %cst_36 = arith.constant 0.000000e+00 : f32
    %155 = vector.broadcast %cst_36 : f32 to vector<1x256xf32>
    %156 = arith.cmpf olt, %126, %155 : vector<1x256xf32>
    %cst_37 = arith.constant 0.000000e+00 : f32
    %157 = vector.broadcast %cst_37 : f32 to vector<1x256xf32>
    %158 = arith.subf %157, %154 : vector<1x256xf32>
    %159 = arith.select %156, %158, %154 : vector<1x256xi1>, vector<1x256xf32>
    %160 = tpu.reciprocal %55 {approx = true} : vector<8x1xf32> -> vector<8x1xf32>
    %161 = arith.mulf %52, %160 : vector<8x1xf32>
    %162 = math.absf %161 : vector<8x1xf32>
    %cst_38 = arith.constant 1.000000e+00 : f32
    %163 = vector.broadcast %cst_38 : f32 to vector<8x1xf32>
    %164 = arith.cmpf ogt, %162, %163 : vector<8x1xf32>
    %cst_39 = arith.constant 1.000000e-30 : f32
    %165 = vector.broadcast %cst_39 : f32 to vector<8x1xf32>
    %166 = arith.maximumf %162, %165 : vector<8x1xf32>
    %167 = tpu.reciprocal %166 {approx = true} : vector<8x1xf32> -> vector<8x1xf32>
    %168 = arith.select %164, %167, %162 : vector<8x1xi1>, vector<8x1xf32>
    %169 = arith.mulf %168, %168 : vector<8x1xf32>
    %cst_40 = arith.constant -1.172120e-02 : f32
    %170 = vector.broadcast %cst_40 : f32 to vector<8x1xf32>
    %171 = arith.mulf %170, %169 : vector<8x1xf32>
    %cst_41 = arith.constant 0.0526533201 : f32
    %172 = vector.broadcast %cst_41 : f32 to vector<8x1xf32>
    %173 = arith.addf %171, %172 : vector<8x1xf32>
    %174 = arith.mulf %173, %169 : vector<8x1xf32>
    %cst_42 = arith.constant -0.116432868 : f32
    %175 = vector.broadcast %cst_42 : f32 to vector<8x1xf32>
    %176 = arith.addf %174, %175 : vector<8x1xf32>
    %177 = arith.mulf %176, %169 : vector<8x1xf32>
    %cst_43 = arith.constant 0.193543464 : f32
    %178 = vector.broadcast %cst_43 : f32 to vector<8x1xf32>
    %179 = arith.addf %177, %178 : vector<8x1xf32>
    %180 = arith.mulf %179, %169 : vector<8x1xf32>
    %cst_44 = arith.constant -0.332623482 : f32
    %181 = vector.broadcast %cst_44 : f32 to vector<8x1xf32>
    %182 = arith.addf %180, %181 : vector<8x1xf32>
    %183 = arith.mulf %182, %169 : vector<8x1xf32>
    %cst_45 = arith.constant 0.999977231 : f32
    %184 = vector.broadcast %cst_45 : f32 to vector<8x1xf32>
    %185 = arith.addf %183, %184 : vector<8x1xf32>
    %186 = arith.mulf %168, %185 : vector<8x1xf32>
    %cst_46 = arith.constant 1.57079637 : f32
    %187 = vector.broadcast %cst_46 : f32 to vector<8x1xf32>
    %188 = arith.subf %187, %186 : vector<8x1xf32>
    %189 = arith.select %164, %188, %186 : vector<8x1xi1>, vector<8x1xf32>
    %cst_47 = arith.constant 0.000000e+00 : f32
    %190 = vector.broadcast %cst_47 : f32 to vector<8x1xf32>
    %191 = arith.cmpf olt, %161, %190 : vector<8x1xf32>
    %cst_48 = arith.constant 0.000000e+00 : f32
    %192 = vector.broadcast %cst_48 : f32 to vector<8x1xf32>
    %193 = arith.subf %192, %189 : vector<8x1xf32>
    %194 = arith.select %191, %193, %189 : vector<8x1xi1>, vector<8x1xf32>
    %195 = vector.broadcast %159 : vector<1x256xf32> to vector<8x256xf32>
    %196 = vector.broadcast %194 : vector<8x1xf32> to vector<8x256xf32>
    %197 = arith.subf %195, %196 : vector<8x256xf32>
    %198 = arith.mulf %197, %197 : vector<8x256xf32>
    %cst_49 = arith.constant 0.405284733 : f32
    %199 = vector.broadcast %cst_49 : f32 to vector<8x256xf32>
    %200 = arith.mulf %199, %198 : vector<8x256xf32>
    %201 = arith.subf %200, %88 : vector<8x256xf32>
    %cst_50 = arith.constant 1.00000012 : f32
    %202 = vector.broadcast %cst_50 : f32 to vector<8x256xf32>
    %203 = arith.addf %201, %202 : vector<8x256xf32>
    %204 = tpu.reciprocal %203 {approx = true} : vector<8x256xf32> -> vector<8x256xf32>
    %205 = arith.mulf %200, %204 : vector<8x256xf32>
    %206 = tpu.reciprocal %107 {approx = true} : vector<8x256xf32> -> vector<8x256xf32>
    %207 = arith.mulf %124, %206 : vector<8x256xf32>
    %208 = arith.mulf %200, %205 : vector<8x256xf32>
    %209 = arith.addf %207, %208 : vector<8x256xf32>
    %210 = arith.subf %88, %209 : vector<8x256xf32>
    %cst_51 = arith.constant 0.000000e+00 : f32
    %211 = vector.broadcast %cst_51 : f32 to vector<8x256xf32>
    %212 = arith.cmpf ogt, %39, %211 : vector<8x256xf32>
    %cst_52 = arith.constant 0.000000e+00 : f32
    %213 = vector.broadcast %cst_52 : f32 to vector<8x256xf32>
    %214 = arith.maximumf %210, %213 : vector<8x256xf32>
    %cst_53 = arith.constant 0.000000e+00 : f32
    %215 = vector.broadcast %cst_53 : f32 to vector<8x256xf32>
    %216 = arith.select %212, %214, %215 : vector<8x256xi1>, vector<8x256xf32>
    %217 = arith.mulf %216, %216 : vector<8x256xf32>
    %218 = arith.mulf %217, %217 : vector<8x256xf32>
    %219 = arith.mulf %217, %218 : vector<8x256xf32>
    %220 = arith.mulf %47, %219 : vector<8x256xf32>
    %221 = tpu.iota {dimensions = array<i32: 1>} : vector<8x256xi32>
    %222 = arith.sitofp %221 : vector<8x256xi32> to vector<8x256xf32>
    %cst_54 = arith.constant 9.99999996E-13 : f32
    %223 = vector.broadcast %cst_54 : f32 to vector<8x256xf32>
    %224 = arith.mulf %222, %223 : vector<8x256xf32>
    %225 = arith.subf %220, %224 : vector<8x256xf32>
    %cst_55 = arith.constant 0.000000e+00 : f32
    %226 = vector.broadcast %cst_55 : f32 to vector<8x256xf32>
    %c0_i32 = arith.constant 0 : i32
    %cst_56 = arith.constant dense<0xFF800000> : vector<8xf32>
    %227 = vector.multi_reduction <maximumf>, %225, %cst_56 [1] : vector<8x256xf32> to vector<8xf32>
    %228 = vector.shape_cast %227 : vector<8xf32> to vector<8x1xf32>
    %229 = vector.broadcast %228 : vector<8x1xf32> to vector<8x256xf32>
    %230 = arith.cmpf oge, %225, %229 : vector<8x256xf32>
    %231 = arith.extui %230 : vector<8x256xi1> to vector<8x256xi32>
    %232 = arith.sitofp %231 : vector<8x256xi32> to vector<8x256xf32>
    %233 = arith.maximumf %226, %232 : vector<8x256xf32>
    %cst_57 = arith.constant 0xFF800000 : f32
    %234 = vector.broadcast %cst_57 : f32 to vector<8x256xf32>
    %235 = arith.select %230, %234, %225 : vector<8x256xi1>, vector<8x256xf32>
    %c1_i32 = arith.constant 1 : i32
    %cst_58 = arith.constant dense<0xFF800000> : vector<8xf32>
    %236 = vector.multi_reduction <maximumf>, %235, %cst_58 [1] : vector<8x256xf32> to vector<8xf32>
    %237 = vector.shape_cast %236 : vector<8xf32> to vector<8x1xf32>
    %238 = vector.broadcast %237 : vector<8x1xf32> to vector<8x256xf32>
    %239 = arith.cmpf oge, %235, %238 : vector<8x256xf32>
    %240 = arith.extui %239 : vector<8x256xi1> to vector<8x256xi32>
    %241 = arith.sitofp %240 : vector<8x256xi32> to vector<8x256xf32>
    %242 = arith.maximumf %233, %241 : vector<8x256xf32>
    %cst_59 = arith.constant 0xFF800000 : f32
    %243 = vector.broadcast %cst_59 : f32 to vector<8x256xf32>
    %244 = arith.select %239, %243, %235 : vector<8x256xi1>, vector<8x256xf32>
    %c2_i32 = arith.constant 2 : i32
    %cst_60 = arith.constant dense<0xFF800000> : vector<8xf32>
    %245 = vector.multi_reduction <maximumf>, %244, %cst_60 [1] : vector<8x256xf32> to vector<8xf32>
    %246 = vector.shape_cast %245 : vector<8xf32> to vector<8x1xf32>
    %247 = vector.broadcast %246 : vector<8x1xf32> to vector<8x256xf32>
    %248 = arith.cmpf oge, %244, %247 : vector<8x256xf32>
    %249 = arith.extui %248 : vector<8x256xi1> to vector<8x256xi32>
    %250 = arith.sitofp %249 : vector<8x256xi32> to vector<8x256xf32>
    %251 = arith.maximumf %242, %250 : vector<8x256xf32>
    %cst_61 = arith.constant 0xFF800000 : f32
    %252 = vector.broadcast %cst_61 : f32 to vector<8x256xf32>
    %253 = arith.select %248, %252, %244 : vector<8x256xi1>, vector<8x256xf32>
    %c3_i32 = arith.constant 3 : i32
    %cst_62 = arith.constant dense<0xFF800000> : vector<8xf32>
    %254 = vector.multi_reduction <maximumf>, %253, %cst_62 [1] : vector<8x256xf32> to vector<8xf32>
    %255 = vector.shape_cast %254 : vector<8xf32> to vector<8x1xf32>
    %256 = vector.broadcast %255 : vector<8x1xf32> to vector<8x256xf32>
    %257 = arith.cmpf oge, %253, %256 : vector<8x256xf32>
    %258 = arith.extui %257 : vector<8x256xi1> to vector<8x256xi32>
    %259 = arith.sitofp %258 : vector<8x256xi32> to vector<8x256xf32>
    %260 = arith.maximumf %251, %259 : vector<8x256xf32>
    %cst_63 = arith.constant 0xFF800000 : f32
    %261 = vector.broadcast %cst_63 : f32 to vector<8x256xf32>
    %262 = arith.select %257, %261, %253 : vector<8x256xi1>, vector<8x256xf32>
    %c4_i32 = arith.constant 4 : i32
    %cst_64 = arith.constant dense<0xFF800000> : vector<8xf32>
    %263 = vector.multi_reduction <maximumf>, %262, %cst_64 [1] : vector<8x256xf32> to vector<8xf32>
    %264 = vector.shape_cast %263 : vector<8xf32> to vector<8x1xf32>
    %265 = vector.broadcast %264 : vector<8x1xf32> to vector<8x256xf32>
    %266 = arith.cmpf oge, %262, %265 : vector<8x256xf32>
    %267 = arith.extui %266 : vector<8x256xi1> to vector<8x256xi32>
    %268 = arith.sitofp %267 : vector<8x256xi32> to vector<8x256xf32>
    %269 = arith.maximumf %260, %268 : vector<8x256xf32>
    %cst_65 = arith.constant 0xFF800000 : f32
    %270 = vector.broadcast %cst_65 : f32 to vector<8x256xf32>
    %271 = arith.select %266, %270, %262 : vector<8x256xi1>, vector<8x256xf32>
    %c5_i32 = arith.constant 5 : i32
    %cst_66 = arith.constant dense<0xFF800000> : vector<8xf32>
    %272 = vector.multi_reduction <maximumf>, %271, %cst_66 [1] : vector<8x256xf32> to vector<8xf32>
    %273 = vector.shape_cast %272 : vector<8xf32> to vector<8x1xf32>
    %274 = vector.broadcast %273 : vector<8x1xf32> to vector<8x256xf32>
    %275 = arith.cmpf oge, %271, %274 : vector<8x256xf32>
    %276 = arith.extui %275 : vector<8x256xi1> to vector<8x256xi32>
    %277 = arith.sitofp %276 : vector<8x256xi32> to vector<8x256xf32>
    %278 = arith.maximumf %269, %277 : vector<8x256xf32>
    %cst_67 = arith.constant 0xFF800000 : f32
    %279 = vector.broadcast %cst_67 : f32 to vector<8x256xf32>
    %280 = arith.select %275, %279, %271 : vector<8x256xi1>, vector<8x256xf32>
    %c6_i32 = arith.constant 6 : i32
    %cst_68 = arith.constant dense<0xFF800000> : vector<8xf32>
    %281 = vector.multi_reduction <maximumf>, %280, %cst_68 [1] : vector<8x256xf32> to vector<8xf32>
    %282 = vector.shape_cast %281 : vector<8xf32> to vector<8x1xf32>
    %283 = vector.broadcast %282 : vector<8x1xf32> to vector<8x256xf32>
    %284 = arith.cmpf oge, %280, %283 : vector<8x256xf32>
    %285 = arith.extui %284 : vector<8x256xi1> to vector<8x256xi32>
    %286 = arith.sitofp %285 : vector<8x256xi32> to vector<8x256xf32>
    %287 = arith.maximumf %278, %286 : vector<8x256xf32>
    %cst_69 = arith.constant 0xFF800000 : f32
    %288 = vector.broadcast %cst_69 : f32 to vector<8x256xf32>
    %289 = arith.select %284, %288, %280 : vector<8x256xi1>, vector<8x256xf32>
    %c7_i32 = arith.constant 7 : i32
    %cst_70 = arith.constant dense<0xFF800000> : vector<8xf32>
    %290 = vector.multi_reduction <maximumf>, %289, %cst_70 [1] : vector<8x256xf32> to vector<8xf32>
    %291 = vector.shape_cast %290 : vector<8xf32> to vector<8x1xf32>
    %292 = vector.broadcast %291 : vector<8x1xf32> to vector<8x256xf32>
    %293 = arith.cmpf oge, %289, %292 : vector<8x256xf32>
    %294 = arith.extui %293 : vector<8x256xi1> to vector<8x256xi32>
    %295 = arith.sitofp %294 : vector<8x256xi32> to vector<8x256xf32>
    %296 = arith.maximumf %287, %295 : vector<8x256xf32>
    %cst_71 = arith.constant 0xFF800000 : f32
    %297 = vector.broadcast %cst_71 : f32 to vector<8x256xf32>
    %298 = arith.select %293, %297, %289 : vector<8x256xi1>, vector<8x256xf32>
    %c8_i32 = arith.constant 8 : i32
    %cst_72 = arith.constant dense<0xFF800000> : vector<8xf32>
    %299 = vector.multi_reduction <maximumf>, %298, %cst_72 [1] : vector<8x256xf32> to vector<8xf32>
    %300 = vector.shape_cast %299 : vector<8xf32> to vector<8x1xf32>
    %301 = vector.broadcast %300 : vector<8x1xf32> to vector<8x256xf32>
    %302 = arith.cmpf oge, %298, %301 : vector<8x256xf32>
    %303 = arith.extui %302 : vector<8x256xi1> to vector<8x256xi32>
    %304 = arith.sitofp %303 : vector<8x256xi32> to vector<8x256xf32>
    %305 = arith.maximumf %296, %304 : vector<8x256xf32>
    %cst_73 = arith.constant 0xFF800000 : f32
    %306 = vector.broadcast %cst_73 : f32 to vector<8x256xf32>
    %307 = arith.select %302, %306, %298 : vector<8x256xi1>, vector<8x256xf32>
    %c9_i32 = arith.constant 9 : i32
    %cst_74 = arith.constant dense<0xFF800000> : vector<8xf32>
    %308 = vector.multi_reduction <maximumf>, %307, %cst_74 [1] : vector<8x256xf32> to vector<8xf32>
    %309 = vector.shape_cast %308 : vector<8xf32> to vector<8x1xf32>
    %310 = vector.broadcast %309 : vector<8x1xf32> to vector<8x256xf32>
    %311 = arith.cmpf oge, %307, %310 : vector<8x256xf32>
    %312 = arith.extui %311 : vector<8x256xi1> to vector<8x256xi32>
    %313 = arith.sitofp %312 : vector<8x256xi32> to vector<8x256xf32>
    %314 = arith.maximumf %305, %313 : vector<8x256xf32>
    %cst_75 = arith.constant 0xFF800000 : f32
    %315 = vector.broadcast %cst_75 : f32 to vector<8x256xf32>
    %316 = arith.select %311, %315, %307 : vector<8x256xi1>, vector<8x256xf32>
    %c10_i32 = arith.constant 10 : i32
    %cst_76 = arith.constant dense<0xFF800000> : vector<8xf32>
    %317 = vector.multi_reduction <maximumf>, %316, %cst_76 [1] : vector<8x256xf32> to vector<8xf32>
    %318 = vector.shape_cast %317 : vector<8xf32> to vector<8x1xf32>
    %319 = vector.broadcast %318 : vector<8x1xf32> to vector<8x256xf32>
    %320 = arith.cmpf oge, %316, %319 : vector<8x256xf32>
    %321 = arith.extui %320 : vector<8x256xi1> to vector<8x256xi32>
    %322 = arith.sitofp %321 : vector<8x256xi32> to vector<8x256xf32>
    %323 = arith.maximumf %314, %322 : vector<8x256xf32>
    %cst_77 = arith.constant 0xFF800000 : f32
    %324 = vector.broadcast %cst_77 : f32 to vector<8x256xf32>
    %325 = arith.select %320, %324, %316 : vector<8x256xi1>, vector<8x256xf32>
    %c11_i32 = arith.constant 11 : i32
    %cst_78 = arith.constant dense<0xFF800000> : vector<8xf32>
    %326 = vector.multi_reduction <maximumf>, %325, %cst_78 [1] : vector<8x256xf32> to vector<8xf32>
    %327 = vector.shape_cast %326 : vector<8xf32> to vector<8x1xf32>
    %328 = vector.broadcast %327 : vector<8x1xf32> to vector<8x256xf32>
    %329 = arith.cmpf oge, %325, %328 : vector<8x256xf32>
    %330 = arith.extui %329 : vector<8x256xi1> to vector<8x256xi32>
    %331 = arith.sitofp %330 : vector<8x256xi32> to vector<8x256xf32>
    %332 = arith.maximumf %323, %331 : vector<8x256xf32>
    %cst_79 = arith.constant 0xFF800000 : f32
    %333 = vector.broadcast %cst_79 : f32 to vector<8x256xf32>
    %334 = arith.select %329, %333, %325 : vector<8x256xi1>, vector<8x256xf32>
    %c12_i32 = arith.constant 12 : i32
    %cst_80 = arith.constant dense<0xFF800000> : vector<8xf32>
    %335 = vector.multi_reduction <maximumf>, %334, %cst_80 [1] : vector<8x256xf32> to vector<8xf32>
    %336 = vector.shape_cast %335 : vector<8xf32> to vector<8x1xf32>
    %337 = vector.broadcast %336 : vector<8x1xf32> to vector<8x256xf32>
    %338 = arith.cmpf oge, %334, %337 : vector<8x256xf32>
    %339 = arith.extui %338 : vector<8x256xi1> to vector<8x256xi32>
    %340 = arith.sitofp %339 : vector<8x256xi32> to vector<8x256xf32>
    %341 = arith.maximumf %332, %340 : vector<8x256xf32>
    %cst_81 = arith.constant 0xFF800000 : f32
    %342 = vector.broadcast %cst_81 : f32 to vector<8x256xf32>
    %343 = arith.select %338, %342, %334 : vector<8x256xi1>, vector<8x256xf32>
    %344 = arith.mulf %341, %37 : vector<8x256xf32>
    %345 = vector.broadcast %12 : vector<8x1xf32> to vector<8x256xf32>
    %346 = arith.mulf %344, %345 : vector<8x256xf32>
    %347 = tpu.iota {dimensions = array<i32: 0>} : vector<8x256xi32>
    %cst_82 = arith.constant dense<0.000000e+00> : vector<256xf32>
    %348 = vector.multi_reduction <add>, %346, %cst_82 [0] : vector<8x256xf32> to vector<256xf32>
    %349 = vector.shape_cast %348 : vector<256xf32> to vector<1x256xf32>
    %cst_83 = arith.constant dense<0xFF800000> : vector<256xf32>
    %350 = vector.multi_reduction <maximumf>, %216, %cst_83 [0] : vector<8x256xf32> to vector<256xf32>
    %351 = vector.shape_cast %350 : vector<256xf32> to vector<1x256xf32>
    %352 = vector.broadcast %351 : vector<1x256xf32> to vector<8x256xf32>
    %353 = arith.cmpf oge, %216, %352 : vector<8x256xf32>
    %c8_i32_84 = arith.constant 8 : i32
    %354 = vector.broadcast %c8_i32_84 : i32 to vector<8x256xi32>
    %355 = arith.select %353, %347, %354 : vector<8x256xi1>, vector<8x256xi32>
    %cst_85 = arith.constant dense<2147483647> : vector<256xi32>
    %356 = vector.multi_reduction <minsi>, %355, %cst_85 [0] : vector<8x256xi32> to vector<256xi32>
    %357 = vector.shape_cast %356 : vector<256xi32> to vector<1x256xi32>
    %358 = vector.broadcast %357 : vector<1x256xi32> to vector<8x256xi32>
    %359 = arith.cmpi eq, %347, %358 : vector<8x256xi32>
    %360 = arith.extui %359 : vector<8x256xi1> to vector<8x256xi32>
    %361 = arith.sitofp %360 : vector<8x256xi32> to vector<8x256xf32>
    %cst_86 = arith.constant 1.000000e+00 : f32
    %362 = vector.broadcast %cst_86 : f32 to vector<1x256xf32>
    %363 = arith.cmpf ogt, %349, %362 : vector<1x256xf32>
    %364 = vector.shape_cast %363 : vector<1x256xi1> to vector<1x256xi1>
    %365 = vector.broadcast %364 : vector<1x256xi1> to vector<8x256xi1>
    %366 = arith.select %365, %361, %346 : vector<8x256xi1>, vector<8x256xf32>
    %cst_87 = arith.constant dense<0.000000e+00> : vector<256xf32>
    %367 = vector.multi_reduction <add>, %366, %cst_87 [0] : vector<8x256xf32> to vector<256xf32>
    %368 = vector.shape_cast %367 : vector<256xf32> to vector<1x256xf32>
    %cst_88 = arith.constant dense<0xFF800000> : vector<256xf32>
    %369 = vector.multi_reduction <maximumf>, %366, %cst_88 [0] : vector<8x256xf32> to vector<256xf32>
    %370 = vector.shape_cast %369 : vector<256xf32> to vector<1x256xf32>
    %371 = vector.broadcast %370 : vector<1x256xf32> to vector<8x256xf32>
    %372 = arith.cmpf oge, %366, %371 : vector<8x256xf32>
    %c8_i32_89 = arith.constant 8 : i32
    %373 = vector.broadcast %c8_i32_89 : i32 to vector<8x256xi32>
    %374 = arith.select %372, %347, %373 : vector<8x256xi1>, vector<8x256xi32>
    %cst_90 = arith.constant dense<2147483647> : vector<256xi32>
    %375 = vector.multi_reduction <minsi>, %374, %cst_90 [0] : vector<8x256xi32> to vector<256xi32>
    %376 = vector.shape_cast %375 : vector<256xi32> to vector<1x256xi32>
    %377 = vector.broadcast %376 : vector<1x256xi32> to vector<8x256xi32>
    %378 = arith.cmpi eq, %347, %377 : vector<8x256xi32>
    %379 = arith.extui %378 : vector<8x256xi1> to vector<8x256xi32>
    %380 = arith.sitofp %379 : vector<8x256xi32> to vector<8x256xf32>
    %381 = arith.mulf %220, %366 : vector<8x256xf32>
    %cst_91 = arith.constant dense<0xFF800000> : vector<8xf32>
    %382 = vector.multi_reduction <maximumf>, %381, %cst_91 [1] : vector<8x256xf32> to vector<8xf32>
    %383 = vector.shape_cast %382 : vector<8xf32> to vector<8x1xf32>
    %384 = arith.mulf %216, %366 : vector<8x256xf32>
    %cst_92 = arith.constant dense<0xFF800000> : vector<8xf32>
    %385 = vector.multi_reduction <maximumf>, %384, %cst_92 [1] : vector<8x256xf32> to vector<8xf32>
    %386 = vector.shape_cast %385 : vector<8xf32> to vector<8x1xf32>
    %cst_93 = arith.constant 9.99999971E-10 : f32
    %387 = vector.broadcast %cst_93 : f32 to vector<8x1xf32>
    %388 = arith.addf %383, %387 : vector<8x1xf32>
    %389 = tpu.reciprocal %388 {approx = true} : vector<8x1xf32> -> vector<8x1xf32>
    %390 = arith.mulf %386, %389 : vector<8x1xf32>
    %391 = vector.broadcast %390 : vector<8x1xf32> to vector<8x256xf32>
    %392 = arith.mulf %381, %391 : vector<8x256xf32>
    %cst_94 = arith.constant dense<0xFF800000> : vector<256xf32>
    %393 = vector.multi_reduction <maximumf>, %392, %cst_94 [0] : vector<8x256xf32> to vector<256xf32>
    %394 = vector.shape_cast %393 : vector<256xf32> to vector<1x256xf32>
    %395 = arith.sitofp %6 : vector<8x1xi32> to vector<8x1xf32>
    %396 = vector.broadcast %395 : vector<8x1xf32> to vector<8x256xf32>
    %397 = arith.mulf %396, %380 : vector<8x256xf32>
    %cst_95 = arith.constant dense<0.000000e+00> : vector<256xf32>
    %398 = vector.multi_reduction <add>, %397, %cst_95 [0] : vector<8x256xf32> to vector<256xf32>
    %399 = vector.shape_cast %398 : vector<256xf32> to vector<1x256xf32>
    %400 = arith.fptosi %399 : vector<1x256xf32> to vector<1x256xi32>
    %401 = tpu.iota {dimensions = array<i32: 0>} : vector<16x256xi32>
    %402 = vector.broadcast %400 : vector<1x256xi32> to vector<16x256xi32>
    %403 = arith.cmpi eq, %401, %402 : vector<16x256xi32>
    %404 = arith.extui %403 : vector<16x256xi1> to vector<16x256xi32>
    %405 = arith.sitofp %404 : vector<16x256xi32> to vector<16x256xf32>
    %cst_96 = arith.constant 0.000000e+00 : f32
    %406 = vector.broadcast %cst_96 : f32 to vector<1x256xf32>
    %407 = arith.cmpf ogt, %368, %406 : vector<1x256xf32>
    %408 = arith.extui %407 : vector<1x256xi1> to vector<1x256xi32>
    %409 = arith.sitofp %408 : vector<1x256xi32> to vector<1x256xf32>
    %410 = arith.mulf %409, %394 : vector<1x256xf32>
    %411 = vector.broadcast %410 : vector<1x256xf32> to vector<16x256xf32>
    %412 = arith.mulf %405, %411 : vector<16x256xf32>
    %c0_97 = arith.constant 0 : index
    %c0_98 = arith.constant 0 : index
    %c0_99 = arith.constant 0 : index
    %413 = vector.load %arg8[%c0_97, %c0_98, %c0_99] : memref<1x16x256xf32, #tpu.memory_space<vmem>>, vector<1x16x256xf32>
    %414 = vector.shape_cast %413 : vector<1x16x256xf32> to vector<16x256xf32>
    %415 = vector.shape_cast %412 : vector<16x256xf32> to vector<1x16x256xf32>
    tpu.vector_store %arg8[%c0_97, %c0_98, %c0_99], %415 {strides = array<i32>} : memref<1x16x256xf32, #tpu.memory_space<vmem>>, vector<1x16x256xf32>,
    %cst_100 = arith.constant dense<0.000000e+00> : vector<4x256xf32>
    %416 = tpu.matmul %10, %380, %cst_100 {dimension_numbers = #tpu.dot_dimension_numbers<[1], [0], [0], [1], [0, 0, 1, 1], [], []>} : vector<4x8xf32>, vector<8x256xf32>, vector<4x256xf32> -> vector<4x256xf32>
    %c0_101 = arith.constant 0 : index
    %c0_102 = arith.constant 0 : index
    %c0_103 = arith.constant 0 : index
    %417 = vector.load %arg9[%c0_101, %c0_102, %c0_103] : memref<1x4x256xf32, #tpu.memory_space<vmem>>, vector<1x4x256xf32>
    %418 = vector.shape_cast %417 : vector<1x4x256xf32> to vector<4x256xf32>
    %419 = vector.shape_cast %416 : vector<4x256xf32> to vector<1x4x256xf32>
    tpu.vector_store %arg9[%c0_101, %c0_102, %c0_103], %419 {strides = array<i32>} : memref<1x4x256xf32, #tpu.memory_space<vmem>>, vector<1x4x256xf32>,
    %c0_104 = arith.constant 0 : index
    %c0_105 = arith.constant 0 : index
    %c0_106 = arith.constant 0 : index
    %420 = vector.load %arg10[%c0_104, %c0_105, %c0_106] : memref<1x1x256xf32, #tpu.memory_space<vmem>>, vector<1x1x256xf32>
    %421 = vector.shape_cast %420 : vector<1x1x256xf32> to vector<1x256xf32>
    %422 = vector.shape_cast %368 : vector<1x256xf32> to vector<1x1x256xf32>
    tpu.vector_store %arg10[%c0_104, %c0_105, %c0_106], %422 {strides = array<i32>} : memref<1x1x256xf32, #tpu.memory_space<vmem>>, vector<1x1x256xf32>,
    return
  }
  func.func @transform_0(%arg0: i32) -> (i32, i32, i32) {
    %c0_i32 = arith.constant 0 : i32
    %c0_i32_0 = arith.constant 0 : i32
    %c0_i32_1 = arith.constant 0 : i32
    return %arg0, %c0_i32, %c0_i32_0 : i32, i32, i32
  }
  func.func @transform_1(%arg0: i32) -> (i32, i32, i32) {
    %c0_i32 = arith.constant 0 : i32
    %c0_i32_0 = arith.constant 0 : i32
    %c0_i32_1 = arith.constant 0 : i32
    return %arg0, %c0_i32, %c0_i32_0 : i32, i32, i32
  }
  func.func @transform_2(%arg0: i32) -> (i32, i32) {
    %c0_i32 = arith.constant 0 : i32
    %c0_i32_0 = arith.constant 0 : i32
    %c0_i32_1 = arith.constant 0 : i32
    return %c0_i32, %c0_i32_0 : i32, i32
  }
  func.func @transform_3(%arg0: i32) -> (i32, i32, i32) {
    %c0_i32 = arith.constant 0 : i32
    %c0_i32_0 = arith.constant 0 : i32
    %c0_i32_1 = arith.constant 0 : i32
    return %arg0, %c0_i32, %c0_i32_0 : i32, i32, i32
  }
  func.func @transform_4(%arg0: i32) -> (i32, i32, i32) {
    %c0_i32 = arith.constant 0 : i32
    %c0_i32_0 = arith.constant 0 : i32
    %c0_i32_1 = arith.constant 0 : i32
    return %arg0, %c0_i32, %c0_i32_0 : i32, i32, i32
  }
  func.func @transform_5(%arg0: i32) -> (i32, i32, i32) {
    %c0_i32 = arith.constant 0 : i32
    %c0_i32_0 = arith.constant 0 : i32
    %c0_i32_1 = arith.constant 0 : i32
    return %arg0, %c0_i32, %c0_i32_0 : i32, i32, i32
  }
  func.func @transform_6(%arg0: i32) -> (i32, i32, i32) {
    %c0_i32 = arith.constant 0 : i32
    %c0_i32_0 = arith.constant 0 : i32
    %c0_i32_1 = arith.constant 0 : i32
    return %arg0, %c0_i32, %c0_i32_0 : i32, i32, i32
  }
  func.func @transform_7(%arg0: i32) -> (i32, i32, i32) {
    %c0_i32 = arith.constant 0 : i32
    %c0_i32_0 = arith.constant 0 : i32
    %c0_i32_1 = arith.constant 0 : i32
    return %arg0, %c0_i32, %c0_i32_0 : i32, i32, i32
  }
  func.func @transform_8(%arg0: i32) -> (i32, i32, i32) {
    %c0_i32 = arith.constant 0 : i32
    %c0_i32_0 = arith.constant 0 : i32
    %c0_i32_1 = arith.constant 0 : i32
    return %arg0, %c0_i32, %c0_i32_0 : i32, i32, i32
  }
  func.func @transform_9(%arg0: i32) -> (i32, i32, i32) {
    %c0_i32 = arith.constant 0 : i32
    %c0_i32_0 = arith.constant 0 : i32
    %c0_i32_1 = arith.constant 0 : i32
    return %arg0, %c0_i32, %c0_i32_0 : i32, i32, i32
  }
}

</mosaic_0001>

<bundles_post_ra>
// kernel: tpu_custom_call.1
= control target key start
LH: loop header
LB: loop body
LE: loop exit
PB: predicated region body
PF: predicated region fallthrough
CT: control target
= control target key end

     0   :  { %s2579_s0 = inlined_call_operand.vmem [shape: bf16[2,16,256], index: 0, kind: input, shape index: {}]   ;;  %s2580_s1 = inlined_call_operand.vmem [shape: f32[2,4,256], index: 1, kind: input, shape index: {}]   ;;  %s2581_s2 = inlined_call_operand.hbm [shape: f32[2,256], index: 2, kind: input, shape index: {}]   ;;  %s2582_s3 = inlined_call_operand.vmem [shape: s32[2,8,1], index: 3, kind: input, shape index: {}]   ;;  %s2583_s4 = inlined_call_operand.vmem [shape: f32[2,8,4], index: 4, kind: input, shape index: {}]   ;;  %s2584_s5 = inlined_call_operand.vmem [shape: f32[2,4,8], index: 5, kind: input, shape index: {}]   ;;  %s2585_s6 = inlined_call_operand.vmem [shape: f32[2,8,1], index: 6, kind: input, shape index: {}]   ;;  %s2586_s7 = inlined_call_operand.hbm [shape: f32[2,16,256], index: 7, kind: output, shape index: {0}]   ;;  %s2587_s8 = inlined_call_operand.hbm [shape: f32[2,4,256], index: 8, kind: output, shape index: {1}]   ;;  %s2588_s9 = inlined_call_operand.hbm [shape: f32[2,1,256], index: 9, kind: output, shape index: {2}]  }
   0x1   :  { %2590 = sst [smem:[#allocation12_spill]] %s2579_s0 }
   0x2   :  { %2591 = sst [smem:[#allocation13_spill]] %s2580_s1 }
   0x3   :  { %2592 = sst [smem:[#allocation14_spill]] %s2581_s2 }
   0x4   :  { %2593 = sst [smem:[#allocation15_spill]] %s2582_s3 }
   0x5   :  { %2594 = sst [smem:[#allocation16_spill]] %s2583_s4 }
   0x6   :  { %2595 = sst [smem:[#allocation17_spill]] %s2584_s5 }
   0x7   :  { %15 = vsyncpa [#allocation3], 0 }
   0x8   :  { %16 = vsyncpa [#allocation4], 0 }
   0x9   :  { %18 = vsyncpa [#allocation4 + $0x1], 0 }
   0xa   :  { %19 = vsyncpa [#allocation7], 0 }
   0xb   :  { %21 = vsyncpa [#allocation7 + $0x1], 0  ;;  %s2067_s30 = smov 0   ;;  %s2069_s10 = smov 0  }
   0xc   :  { %s2071_s11 = smov 0   ;;  %s2073_s12 = smov 0  }
   0xd LB: > { %s2088_s13 = sadd.s32 4294967295, %s2000_s12   ;;  %s2589_s14 = sadd.s32 4294967294, %s2000_s12   ;;  %s2000_s12 = sphi %s2073_s12, %s2611_s12   ;;  %s1996_s11 = sphi %s2071_s11, %s2610_s11   ;;  %s1992_s10 = sphi %s2069_s10, %s2609_s10   ;;  %s1988_s30 = sphi %s2067_s30, %s2608_s30  }
   0xe   : > { %s2092_s15 = sadd.s32 1, %s2000_s12   ;;  %s211_s16 = sadd.s32 1, %s1996_s11 }
   0xf   : > { %s208_s17 = ssub.s32 %s2000_s12, %s2092_s15  ;;  %p221_p0 = scmp.ne.s32.totalorder %s1996_s11, %s1992_s10 }
  0x10   : > { %p209_p1 = scmp.eq.s32.totalorder %s208_s17, 0  ;;  %p222_p2 = scmp.eq.s32.totalorder %s2088_s13, 1 }
  0x11   : > { %p227_p3 = scmp.ne.s32.totalorder %s1992_s10, %s1988_s30  ;;  %p228_p4 = scmp.eq.s32.totalorder %s2589_s14, 1 }
  0x12   : > { %s2105_s18 = scalar_select %p209_p1, %s1996_s11, %s211_s16  }
  0x13   : > { %p2107_p5 = por %p222_p2, %p221_p0  ;;  %p2111_p6 = por %p228_p4, %p227_p3 }
  0x14   : > { %p1665_p7 = scmp.ge.s32.totalorder %s2000_s12, 1  ;;  %p287_p8 = scmp.lt.s32.totalorder %s2000_s12, 3 }
  0x15   : > { %s2597_s20 = scalar_select %p2111_p6, 1, 0 }
  0x16   : > { %p1772_p9 = scmp.eq.s32.totalorder %s2088_s13, 0  ;;  %p2118_p10 = pnand %p1665_p7, %p287_p8 }
  0x17   : > { %s2002_s22 = smov [#allocation2]  }
  0x18   : > { %s300_s23 = sshll.u32 %s2002_s22, 4  ;;  %p1758_p11 = pneg %p2118_p10  ;;  %s301_s23 = int_to_ptr.vmem [resolvable:$true] %s300_s23 }
  0x19   : > { %s1865_s24 = scalar_lea.vmem %s301_s23, 64  ;;  %p1873_p3 = scmp.lt.s32.totalorder %s301_s23, %s301_s23 }
  0x1a   : > { %p1759_p12 = pnand %p1772_p9, %p1758_p11  ;;  %p1866_p0 = scmp.ne.s32.totalorder %s301_s23, %s1865_s24 }
  0x1b   : > { %p1874_p4 = scmp.lt.s32.totalorder %s1865_s24, %s1865_s24 }
  0x1c   : > { %p1856_p13 = pneg %p1759_p12 }
  0x1d   : > { %p1875_p6 = por %p1874_p4, %p1873_p3 }
  0x1e   : > { %p1868_p1 = pnand %p1866_p0, %p1856_p13 }
  0x20   : > { %p1869_p2 = pneg %p1868_p1 }
  0x22   : > { %p1876_p7 = pnand %p1875_p6, %p1869_p2 }
  0x24   : > { %1879 = shalt.err (!%p1876_p7)
}
  0x25   : > { %s2599_s2 = sld [smem:[#allocation14_spill]] }
  0x27   : > { %357 = sbr.rel (%p2118_p10) target bundleno = 2649 (0xa59), region = 48 }
  0x2b   : > { %1761 = dma.hbm_to_vmem [thread:$0]  (!%p1759_p12), %s2599_s2, 64, %s301_s23, [#allocation3]  }
  0x2c   : > { %1975 = dma.done.wait (%p1772_p9), [#allocation3], 64  }
  0x2d   : > { %1977 = vsyncadd (%p1772_p9), [#allocation3], 4294967232  ;;  %p424_p8 = scmp.lt.s32.totalorder %s2088_s13, 1  ;;  %v2003_v0 = vmov 0   ;;  %s2600_s4 = sld [smem:[#allocation16_spill]]  ;;  %v2005_v3 = vmov 0.0   ;;  %v460_v10 = vlaneseq }
  0x2e   : > { %1819 = vset.pattern.permute.xlu0 %v2003_v0  ;;  %595 = vmatprep.mubr.bf16.mxu0 %v2003_v0  ;;  %s2601_s3 = sld [smem:[#allocation15_spill]]  ;;  %s2004_s24 = smov 2   ;;  %v2006_v9 = vmov 1   ;;  %v2007_v12 = vmov 2   ;;  %vm559_vm1 = vcmask 130048   ;;  %v2009_v17 = vmov 3  }
  0x2f   : > { %s2139_s27 = scalar_select %p424_p8, %s2088_s13, 1  ;;  %1820 = vset.pattern.permute.xlu1 %v2003_v0  ;;  %1382 = vmatprep.mubr.f32.mxu1 %v2005_v3  ;;  %v2162_v11 = vand.u32 127, %v460_v10 }
  0x30   : > { %s2602_s0 = sld [smem:[#allocation12_spill]]  ;;  %s2012_s14 = smov [#allocation5]  }
  0x31   : > { %s2143_s28 = sshll.u32 %s2139_s27, 3  ;;  %s1739_s25 = sshll.u32 %s2139_s27, 4 }
  0x32   : > { %s2603_s1 = sld [smem:[#allocation13_spill]]  ;;  %s449_s22 = scalar_lea.vmem %s2585_s6, %s2143_s28 }
  0x33   : > { %s441_s17 = scalar_lea.vmem %s2600_s4, %s2143_s28  ;;  %v458_v48 = vld [vmem:[%s449_s22] sm:$0xff]  ;;  %s2604_s5 = sld [smem:[#allocation17_spill]] }
  0x34   : > { %s2153_s23 = scalar_lea.vmem %s2601_s3, %s2143_s28  ;;  %v456_v1 = vld [vmem:[%s441_s17] sm:$0xff]  ;;  %s1741_s17 = sshll.u32 %s2088_s13, 9 }
  0x35   : > { %606 = vrot.lane.b32.xlu0 %v456_v1, %s2004_s24  ;;  %v455_v2 = vld [vmem:[%s2153_s23] sm:$0xff] }
  0x36   : > { %s428_s2 = scalar_lea.vmem %s2602_s0, %s1739_s25  ;;  %s1679_s25 = sshll.u32 %s2139_s27, 2 }
  0x37   : > { %v1828_v4 = vld [vmem:[%s428_s2 + $0x4] ss:$8 sps:$4 sm:$0xff]   ;;  %v1830_v5 = vld [vmem:[%s428_s2] ss:$8 sps:$4 sm:$0xff]   ;;  %s2008_s2 = smov 127  }
  0x38   : > { %577 = vmatprep.subr.bf16.mxu0 %v1828_v4  ;;  %s433_s16 = scalar_lea.vmem %s2603_s1, %s2143_s28  ;;  %s2431_s28 = sand.u32 1, %s1992_s10  }
  0x39   : > { %543 = vperm.xlu0 %1819, %v455_v2   ;;  %578 = vmatpush1.bf16.msra.mxu0 %v1830_v5  ;;  %v2170_v21 = vld [vmem:[%s433_s16] sm:$0xff]  ;;  %s1672_s24 = sshll.u32 %s2431_s28, 1  ;;  %s445_s29 = scalar_lea.vmem %s2604_s5, %s1679_s25 }
  0x3a   : > { %v612_v25 = vrot.slane %v2170_v21, 6  ;;  %s2441_s26 = scalar_lea.vmem [#allocation8], %s1672_s24  ;;  %s1670_s27 = sshll.u32 %s2431_s28, 5 }
  0x3b   : > { %s2472_s24 = scalar_lea.hbm %s2586_s7, %s1741_s17 }
  0x3c   : > { %v770_v26 = vrot.slane %v612_v25, 4  ;;  %v2179_v43 = vsub.f32 %v2170_v21, %v612_v25 }
  0x3d   : > { %1821 = vset.pattern.permute.xlu0 %v2006_v9 }
  0x3e   : > { %504 = vperm.xlu0 %1821, %v456_v1   ;;  %v2174_v27 = vadd.f32 %v770_v26, %v2170_v21  ;;  %v2187_v47 = vadd.f32 1e-07, %v2179_v43 }
  0x42   : > { %1824 = vset.pattern.permute.xlu0 %v2007_v12 }
  0xa7   : > { %v607_v6 = vpop.permute.xlu0 %606 }
  0xa8   : > { %v609_v7 = vsub.f32 %v456_v1, %v607_v6 }
  0xaa   : > { %v610_v8 = vadd.f32 1e-07, %v609_v7 }
  0xac   : > { %1831 = vrcp.f32 %v610_v8 }
  0xb4   : > { %v544_v13 = vpop.permute.xlu0 %543 }
  0xb5   : > { %vm545_vm0 = vcmp.eq.s32.totalorder %v2162_v11, %v544_v13 }
  0xb6   : > { %v1683_v14 = vsel %vm545_vm0, 1.0, %v2005_v3 }
  0xb7   : > { %v548_v15 = vpack.c.bf16 %v1683_v14, %v1683_v14 }
  0xb9   : > { %v1832_v16 = vpop.eup %1831  ;;  %1686 = vmatmul.mubr.msk.bf16.vlgmr.msra.gmra.mxu0 %vm559_vm1, %v548_v15 }
  0xba   : > { %856 = vrot.lane.b32.xlu1 %v1832_v16, %s2008_s2 }
  0xbe   : > { %707 = vrot.lane.b32.xlu1 %v610_v8, %s2008_s2 }
  0xc2   : > { %480 = vperm.xlu1 %1820, %v456_v1  }
  0xc6   : > { %1822 = vset.pattern.permute.xlu1 %v2007_v12 }
  0xc7   : > { %512 = vperm.xlu1 %1822, %v456_v1  }
  0xcb   : > { %1823 = vset.pattern.permute.xlu1 %v2009_v17 }
  0xcc   : > { %518 = vperm.xlu1 %1823, %v456_v1  }
  0xd0   : > { %1825 = vset.pattern.permute.xlu1 %v2007_v12 }
 0x12c   : > { %v857_v18 = vpop.permute.xlu1 %856 }
 0x12d   : > { %v859_v19 = vmul.f32 %v857_v18, %v609_v7 }
 0x12f   : > { %v860_v20 = vand.u32 2147483647, %v859_v19  ;;  %vm879_vm3 = vcmp.lt.f32.partialorder %v859_v19, 0.0 }
 0x130   : > { %v708_v22 = vpop.permute.xlu1 %707 }
 0x131   : > { %v862_v23 = vmax.f32 %v860_v20, 1e-30  ;;  %v710_v24 = vmul.f32 %v708_v22, %v609_v7  ;;  %vm861_vm2 = vcmp.gt.f32.partialorder %v860_v20, 1.0 }
 0x133   : > { %1833 = vrcp.f32 %v862_v23  ;;  %718 = vperm.xlu0 %1824, %v710_v24  }
 0x134   : > { %1835 = vrcp.f32 %v2187_v47 }
 0x137   : > { %1827 = vset.pattern.permute.xlu0 %v2003_v0 }
 0x13d   : > { %v2213_v2 = vpop.permute.xlu1 %480 }
 0x140   : > { %v1834_v28 = vpop.eup %1833 }
 0x141   : > { %v864_v29 = vsel %vm861_vm2, %v1834_v28, %v860_v20  ;;  %v1836_v49 = vpop.eup %1835 }
 0x142   : > { %v865_v30 = vmul.f32 %v864_v29, %v864_v29  ;;  %v1688_v50 = vrot.slane %v1836_v49, 9  ;;  %v2233_v15 = vpop.permute.xlu1 %512 }
 0x144   : > { %v866_v31 = vmul.f32 -0.0117212, %v865_v30  ;;  %v2192_v51 = vmul.f32 %v1688_v50, %v2179_v43 }
 0x146   : > { %v867_v32 = vadd.f32 0.05265332, %v866_v31  ;;  %v2197_v53 = vand.u32 2147483647, %v2192_v51  ;;  %vm851_vm5 = vcmp.lt.f32.partialorder %v2192_v51, 0.0 }
 0x148   : > { %v868_v33 = vmul.f32 %v867_v32, %v865_v30  ;;  %v834_v56 = vmax.f32 %v2197_v53, 1e-30  ;;  %vm833_vm4 = vcmp.gt.f32.partialorder %v2197_v53, 1.0 }
 0x14a   : > { %v869_v34 = vadd.f32 -0.11643287, %v868_v33  ;;  %1837 = vrcp.f32 %v834_v56  ;;  %v1687_v33 = vrot.slane %v2187_v47, 9 }
 0x14c   : > { %v870_v35 = vmul.f32 %v869_v34, %v865_v30  ;;  %v2261_v34 = vpop.permute.xlu1 %518 }
 0x14e   : > { %v871_v36 = vadd.f32 0.19354346, %v870_v35 }
 0x150   : > { %v872_v37 = vmul.f32 %v871_v36, %v865_v30 }
 0x152   : > { %v873_v38 = vadd.f32 -0.33262348, %v872_v37 }
 0x154   : > { %v874_v39 = vmul.f32 %v873_v38, %v865_v30 }
 0x156   : > { %v875_v40 = vadd.f32 0.99997723, %v874_v39 }
 0x157   : > { %v1838_v58 = vpop.eup %1837 }
 0x158   : > { %v876_v41 = vmul.f32 %v875_v40, %v864_v29  ;;  %v2206_v59 = vsel %vm833_vm4, %v1838_v58, %v2197_v53  ;;  %v2255_v29 = vpop.permute.xlu0 %504 }
 0x159   : > { %v837_v60 = vmul.f32 %v2206_v59, %v2206_v59 }
 0x15a   : > { %v877_v42 = vsub.f32 1.5707964, %v876_v41 }
 0x15b   : > { %v838_v61 = vmul.f32 -0.0117212, %v837_v60 }
 0x15c   : > { %v878_v44 = vsel %vm861_vm2, %v877_v42, %v876_v41 }
 0x15d   : > { %v880_v45 = vsub.f32 0.0, %v878_v44  ;;  %v839_v62 = vadd.f32 0.05265332, %v838_v61 }
 0x15f   : > { %v881_v46 = vsel %vm879_vm3, %v880_v45, %v878_v44  ;;  %v840_v63 = vmul.f32 %v839_v62, %v837_v60  ;;  %v715_v44 = vmul.f32 %v1687_v33, %v2179_v43 }
 0x160   : > { %903 = vperm.xlu1 %1825, %v881_v46  }
 0x161   : > { %v841_v1 = vadd.f32 -0.11643287, %v840_v63 }
 0x163   : > { %v842_v5 = vmul.f32 %v841_v1, %v837_v60 }
 0x164   : > { %1826 = vset.pattern.permute.xlu1 %v2003_v0  ;;  %v2211_v0 = vshrl.u32 %v460_v10, 7 }
 0x165   : > { %535 = vperm.xlu1 %1826, %v458_v48   ;;  %v843_v17 = vadd.f32 0.19354346, %v842_v5 }
 0x166   : > { %v2216_v4 = vsub.s32 1, %v2211_v0  ;;  %v2219_v6 = vsub.s32 0, %v2211_v0  ;;  %v2222_v7 = vsub.s32 2, %v2211_v0  ;;  %v2225_v8 = vsub.s32 3, %v2211_v0 }
 0x167   : > { %v2228_v9 = vsub.s32 6, %v2211_v0  ;;  %v642_v12 = vsub.s32 4, %v2211_v0  ;;  %v666_v13 = vsub.s32 7, %v2211_v0  ;;  %v686_v14 = vsub.s32 5, %v2211_v0 }
 0x168   : > { %v683_v16 = vrot.slane %v2170_v21, %v2216_v4  ;;  %v619_v18 = vrot.slane %v2170_v21, %v2222_v7  ;;  %v639_v19 = vrot.slane %v2170_v21, %v2219_v6  ;;  %v663_v20 = vrot.slane %v2170_v21, %v2225_v8 }
 0x169   : > { %v623_v22 = vrot.slane %v2170_v21, %v2228_v9  ;;  %v643_v23 = vrot.slane %v2170_v21, %v642_v12  ;;  %v667_v24 = vrot.slane %v2170_v21, %v666_v13  ;;  %v687_v25 = vrot.slane %v2170_v21, %v686_v14 }
 0x16a   : > { %v2253_v26 = vrot.slane %v683_v16, %v2216_v4  ;;  %v844_v28 = vmul.f32 %v843_v17, %v837_v60  ;;  %v629_v30 = vrot.slane %v619_v18, %v2222_v7  ;;  %v649_v31 = vrot.slane %v639_v19, %v2219_v6 }
 0x16b   : > { %v673_v32 = vrot.slane %v663_v20, %v2225_v8  ;;  %v633_v35 = vrot.slane %v623_v22, %v2222_v7  ;;  %v653_v21 = vrot.slane %v643_v23, %v2219_v6  ;;  %v677_v36 = vrot.slane %v667_v24, %v2225_v8 }
 0x16c   : > { %v697_v37 = vrot.slane %v687_v25, %v2216_v4  ;;  %v698_v38 = vmax.f32 %v2255_v29, %v2253_v26  ;;  %v845_v39 = vadd.f32 -0.33262348, %v844_v28  ;;  %v634_v40 = vmin.f32 %v2233_v15, %v629_v30 }
 0x16d   : > { %v654_v41 = vmax.f32 %v2213_v2, %v649_v31  ;;  %v678_v42 = vmin.f32 %v2261_v34, %v673_v32  ;;  %v635_v45 = vmin.f32 %v2233_v15, %v633_v35  ;;  %v655_v46 = vmax.f32 %v2213_v2, %v653_v21 }
 0x16e   : > { %v679_v47 = vmin.f32 %v2261_v34, %v677_v36  ;;  %v699_v48 = vmax.f32 %v2255_v29, %v697_v37  ;;  %v846_v49 = vmul.f32 %v845_v39, %v837_v60  ;;  %v725_v56 = vrot.slane %v715_v44, %v2222_v7 }
 0x16f   : > { %v656_v50 = vsub.f32 %v634_v40, %v654_v41  ;;  %v729_v61 = vrot.slane %v715_v44, %v2228_v9  ;;  %v758_v40 = vmin.f32 %v2255_v29, %v2253_v26  ;;  %v752_v41 = vmin.f32 %v2213_v2, %v649_v31 }
 0x170   : > { %v701_v58 = vsub.f32 %v679_v47, %v699_v48  ;;  %v847_v62 = vadd.f32 0.99997723, %v846_v49  ;;  %v735_v1 = vrot.slane %v725_v56, %v2222_v7  ;;  %v759_v44 = vmin.f32 %v2255_v29, %v697_v37 }
 0x171   : > { %v658_v63 = vmax.f32 %v656_v50, 0.0  ;;  %v739_v17 = vrot.slane %v729_v61, %v2222_v7  ;;  %v751_v53 = vmax.f32 %v2233_v15, %v633_v35  ;;  %v805_v61 = vrot.slane %v2174_v27, %v686_v14 }
 0x172   : > { %v703_v16 = vmax.f32 %v701_v58, 0.0  ;;  %v848_v60 = vmul.f32 %v847_v62, %v2206_v59  ;;  %v750_v59 = vmax.f32 %v2233_v15, %v629_v30 }
 0x174   : > { %v849_v23 = vsub.f32 1.5707964, %v848_v60  ;;  %v754_v26 = vsub.f32 %v750_v59, %v752_v41 }
 0x176   : > { %v850_v28 = vsel %vm833_vm4, %v849_v23, %v848_v60  ;;  %v762_v50 = vmul.f32 %v754_v26, %v754_v26 }
 0x177   : > { %v852_v39 = vsub.f32 0.0, %v850_v28 }
 0x179   : > { %v2194_v52 = vpop.f32.mrf.mxu0  ;;  %v853_v47 = vsel %vm851_vm5, %v852_v39, %v850_v28 }
 0x17a   : > { %v886_v51 = vrot.slane %v853_v47, %v2222_v7  ;;  %v890_v30 = vrot.slane %v853_v47, %v2228_v9  ;;  %v781_v9 = vrot.slane %v2174_v27, %v642_v12 }
 0x17b   : > { %v2199_v54 = vpop.f32.mrf.mxu0 }
 0x17c   : > { %v900_v37 = vrot.slane %v890_v30, %v2222_v7  ;;  %v791_v12 = vrot.slane %v781_v9, %v2219_v6 }
 0x17d   : > { %v601_v55 = vpop.f32.mrf.mxu0 }
 0x17e   : > { %v700_v55 = vsub.f32 %v678_v42, %v698_v38  ;;  %v756_v42 = vmax.f32 %v2261_v34, %v673_v32 }
 0x17f   : > { %v602_v57 = vpop.f32.mrf.mxu0 }
 0x180   : > { %v657_v57 = vsub.f32 %v635_v45, %v655_v46  ;;  %v702_v43 = vmax.f32 %v700_v55, 0.0  ;;  %v753_v45 = vmin.f32 %v2213_v2, %v653_v21  ;;  %v757_v46 = vmax.f32 %v2261_v34, %v677_v36 }
 0x181   : > { %v760_v48 = vsub.f32 %v756_v42, %v758_v40  ;;  %v896_v55 = vrot.slane %v886_v51, %v2222_v7  ;;  %v777_v21 = vrot.slane %v2174_v27, %v2219_v6  ;;  %v801_v36 = vrot.slane %v2174_v27, %v2216_v4 }
 0x182   : > { %v659_v13 = vmax.f32 %v657_v57, 0.0  ;;  %v704_v18 = vmul.f32 %v702_v43, %v658_v63  ;;  %v755_v49 = vsub.f32 %v751_v53, %v753_v45  ;;  %v761_v31 = vsub.f32 %v757_v46, %v759_v44  ;;  %v454_v57 = vld [vmem:[#allocation2] sm:$0xf] }
 0x183   : > { %v764_v32 = vmul.f32 %v760_v48, %v760_v48  ;;  %v811_v60 = vrot.slane %v801_v36, %v2216_v4  ;;  %v488_v27 = vrot.slane %v454_v57, %v2216_v4  ;;  %v467_v39 = vrot.slane %v454_v57, %v2222_v7 }
 0x184   : > { %v705_v20 = vmul.f32 %v703_v16, %v659_v13  ;;  %v763_v35 = vmul.f32 %v755_v49, %v755_v49  ;;  %v765_v56 = vmul.f32 %v761_v31, %v761_v31  ;;  %v463_v16 = vrot.slane %v454_v57, %v2219_v6 }
 0x185   : > { %v766_v58 = vadd.f32 %v764_v32, %v762_v50  ;;  %v492_v40 = vrot.slane %v454_v57, %v2225_v8  ;;  %v816_v41 = vsub.f32 %v811_v60, %v2255_v29  ;;  %v498_v7 = vrot.slane %v488_v27, %v2216_v4 }
 0x186   : > { %v767_v13 = vadd.f32 %v765_v56, %v763_v35  ;;  %v473_v53 = vrot.slane %v463_v16, %v2219_v6  ;;  %v477_v8 = vrot.slane %v467_v39, %v2219_v6 }
 0x187   : > { %v768_v23 = vadd.f32 1e-07, %v766_v58  ;;  %v502_v47 = vrot.slane %v492_v40, %v2216_v4  ;;  %v818_v48 = vsub.f32 %v816_v41, %v2261_v34  ;;  %v507_v31 = vsub.f32 %v498_v7, %v2255_v29 }
 0x188   : > { %v483_v49 = vsub.f32 %v473_v53, %v2213_v2  ;;  %v515_v50 = vsub.f32 %v2233_v15, %v473_v53  ;;  %v516_v35 = vsub.f32 %v2233_v15, %v477_v8  ;;  %v945_v53 = vcvt.s32.f32 %v2162_v11 }
 0x189   : > { %v508_v32 = vsub.f32 %v502_v47, %v2255_v29  ;;  %v522_v56 = vsub.f32 %v2261_v34, %v502_v47 }
 0x18a   : > { %v509_v57 = vmin.f32 %v483_v49, %v507_v31 }
 0x1ae   : > { %v719_v5 = vpop.permute.xlu0 %718 }
 0x1af   : > { %v740_v19 = vadd.f32 %v735_v1, %v719_v5  ;;  %v741_v22 = vadd.f32 %v739_v17, %v719_v5  ;;  %v787_v17 = vrot.slane %v777_v21, %v2219_v6  ;;  %v521_v6 = vsub.f32 %v2261_v34, %v498_v7 }
 0x1b1   : > { %v742_v24 = vsub.f32 %v740_v19, %v704_v18  ;;  %v743_v25 = vsub.f32 %v741_v22, %v705_v20  ;;  %v792_v59 = vsub.f32 %v787_v17, %v2213_v2  ;;  %v523_v58 = vmin.f32 %v515_v50, %v521_v6 }
 0x1b3   : > { %v744_v33 = vadd.f32 1e-07, %v742_v24  ;;  %v745_v38 = vadd.f32 1e-07, %v743_v25  ;;  %v815_v24 = vrot.slane %v805_v61, %v2216_v4  ;;  %v794_v26 = vsub.f32 %v792_v59, %v2233_v15 }
 0x1b4   : > { %v484_v4 = vsub.f32 %v477_v8, %v2213_v2 }
 0x1b5   : > { %1839 = vrcp.f32 %v744_v33 }
 0x1b6   : > { %1841 = vrcp.f32 %v745_v38  ;;  %v769_v38 = vadd.f32 1e-07, %v767_v13  ;;  %v510_v61 = vmin.f32 %v484_v4, %v508_v32 }
 0x1b7   : > { %1843 = vrcp.f32 %v768_v23 }
 0x1b8   : > { %1845 = vrcp.f32 %v769_v38 }
 0x1c2   : > { %v1840_v63 = vpop.eup %1839 }
 0x1c3   : > { %v1842_v5 = vpop.eup %1841  ;;  %v2314_v14 = vmul.f32 %v1840_v63, %v704_v18  ;;  %v793_v18 = vsub.f32 %v791_v12, %v2213_v2 }
 0x1c4   : > { %v2316_v25 = vmul.f32 %v1842_v5, %v705_v20  ;;  %v817_v20 = vsub.f32 %v815_v24, %v2255_v29 }
 0x1c5   : > { %v795_v51 = vsub.f32 %v793_v18, %v2233_v15 }
 0x1c6   : > { %v819_v30 = vsub.f32 %v817_v20, %v2261_v34 }
 0x1c7   : > { %v797_v21 = vmul.f32 %v795_v51, %v795_v51 }
 0x1c8   : > { %v821_v36 = vmul.f32 %v819_v30, %v819_v30 }
 0x1ca   : > { %v823_v63 = vadd.f32 %v821_v36, %v797_v21 }
 0x1cc   : > { %v825_v16 = vmul.f32 0.25, %v823_v63 }
 0x1db   : > { %v904_v62 = vpop.permute.xlu1 %903 }
 0x1dc   : > { %v906_v43 = vsub.f32 %v896_v55, %v904_v62  ;;  %v907_v1 = vsub.f32 %v900_v37, %v904_v62  ;;  %v796_v55 = vmul.f32 %v794_v26, %v794_v26  ;;  %v820_v37 = vmul.f32 %v818_v48, %v818_v48 }
 0x1dd   : > { %v524_v62 = vmin.f32 %v516_v35, %v522_v56  ;;  %v947_v26 = vmul.f32 1e-12, %v945_v53 }
 0x1de   : > { %v908_v19 = vmul.f32 %v906_v43, %v906_v43  ;;  %v909_v22 = vmul.f32 %v907_v1, %v907_v1  ;;  %v822_v9 = vadd.f32 %v820_v37, %v796_v55  ;;  %v1844_v43 = vpop.eup %1843  ;;  %v525_v1 = vmin.f32 %v509_v57, %v523_v58 }
 0x1df   : > { %v1846_v5 = vpop.eup %1845  ;;  %v526_v13 = vmin.f32 %v510_v61, %v524_v62 }
 0x1e0   : > { %v910_v28 = vmul.f32 0.40528473, %v908_v19  ;;  %v911_v33 = vmul.f32 0.40528473, %v909_v22  ;;  %v824_v2 = vmul.f32 0.25, %v822_v9  ;;  %v2342_v22 = vpop.permute.xlu1 %535  ;;  %v923_v23 = vmul.f32 %v1846_v5, %v825_v16 }
 0x1e1   : > { %vm527_vm6 = vcmp.gt.f32.partialorder %v525_v1, 1e-09  ;;  %vm528_vm7 = vcmp.gt.f32.partialorder %v526_v13, 1e-09 }
 0x1e2   : > { %v912_v42 = vsub.f32 %v910_v28, %v2314_v14  ;;  %v913_v44 = vsub.f32 %v911_v33, %v2316_v25  ;;  %v922_v34 = vmul.f32 %v1844_v43, %v824_v2  ;;  %v2345_v27 = vsel %vm527_vm6, 1.0, %v2005_v3 }
 0x1e3   : > { %v538_v39 = vmul.f32 %v2345_v27, %v2342_v22  ;;  %v2350_v40 = vsel %vm528_vm7, 1.0, %v2005_v3 }
 0x1e4   : > { %v914_v45 = vadd.f32 1.0000001, %v912_v42  ;;  %v915_v46 = vadd.f32 1.0000001, %v913_v44 }
 0x1e5   : > { %vm930_vm8 = vcmp.gt.f32.partialorder %v538_v39, 0.0  ;;  %v604_v8 = vmul.f32 %v2194_v52, %v538_v39 }
 0x1e6   : > { %1847 = vrcp.f32 %v914_v45 }
 0x1e7   : > { %1849 = vrcp.f32 %v915_v46 }
 0x1f3   : > { %v1848_v29 = vpop.eup %1847 }
 0x1f4   : > { %v1850_v17 = vpop.eup %1849  ;;  %v918_v60 = vmul.f32 %v1848_v29, %v910_v28 }
 0x1f5   : > { %v919_v15 = vmul.f32 %v1850_v17, %v911_v33 }
 0x1f6   : > { %v924_v19 = vmul.f32 %v918_v60, %v910_v28  ;;  %v539_v28 = vmul.f32 %v2350_v40, %v2342_v22 }
 0x1f7   : > { %v925_v12 = vmul.f32 %v919_v15, %v911_v33  ;;  %v944_v33 = vadd.s32 128, %v2162_v11 }
 0x1f8   : > { %v926_v24 = vadd.f32 %v924_v19, %v922_v34  ;;  %vm931_vm9 = vcmp.gt.f32.partialorder %v539_v28, 0.0  ;;  %v605_v48 = vmul.f32 %v2199_v54, %v539_v28 }
 0x1f9   : > { %v927_v38 = vadd.f32 %v925_v12, %v923_v23  ;;  %v946_v46 = vcvt.s32.f32 %v944_v33 }
 0x1fa   : > { %v928_v59 = vsub.f32 %v2314_v14, %v926_v24 }
 0x1fb   : > { %v929_v41 = vsub.f32 %v2316_v25, %v927_v38  ;;  %v948_v30 = vmul.f32 1e-12, %v946_v46 }
 0x1fc   : > { %v932_v42 = vmax.f32 %v928_v59, 0.0 }
 0x1fd   : > { %v933_v44 = vmax.f32 %v929_v41, 0.0 }
 0x1fe   : > { %v2357_v18 = vsel %vm930_vm8, %v932_v42, 0.0 }
 0x1ff   : > { %v936_v20 = vmul.f32 %v2357_v18, %v2357_v18  ;;  %v2362_v45 = vsel %vm931_vm9, %v933_v44, 0.0 }
 0x200   : > { %v937_v14 = vmul.f32 %v2362_v45, %v2362_v45 }
 0x201   : > { %v938_v25 = vmul.f32 %v936_v20, %v936_v20 }
 0x202   : > { %v939_v7 = vmul.f32 %v937_v14, %v937_v14 }
 0x203   : > { %v940_v47 = vmul.f32 %v938_v25, %v936_v20 }
 0x204   : > { %v941_v51 = vmul.f32 %v939_v7, %v937_v14 }
 0x205   : > { %v2368_v49 = vmul.f32 %v940_v47, %v604_v8 }
 0x206   : > { %v2370_v31 = vmul.f32 %v941_v51, %v605_v48 }
 0x207   : > { %v949_v11 = vsub.f32 %v2368_v49, %v947_v26 }
 0x208   : > { %v950_v50 = vsub.f32 %v2370_v31, %v948_v30 }
 0x20a   : > { %v951_v6 = vmax.f32 %v949_v11, %v950_v50 }
 0x20c   : > { %952 = vmax.xlane.f32.xlu0 %v951_v6 }
 0x295   : > { %v953_v4 = vpop.xlane.xlu0 %952 }
 0x296   : > { %vm954_vm10 = vcmp.ge.f32.partialorder %v949_v11, %v953_v4  ;;  %vm955_vm11 = vcmp.ge.f32.partialorder %v950_v50, %v953_v4 }
 0x297   : > { %v962_v52 = vsel %vm954_vm10, -inf, %v949_v11  ;;  %v963_v32 = vsel %vm955_vm11, -inf, %v950_v50  ;;  %v1689_v54 = vsel %vm954_vm10, 1.0, %v2005_v3  ;;  %v1690_v37 = vsel %vm955_vm11, 1.0, %v2005_v3 }
 0x298   : > { %v964_v55 = vmax.f32 %v962_v52, %v963_v32  ;;  %v960_v56 = vmax.f32 %v1689_v54, 0.0  ;;  %v961_v21 = vmax.f32 %v1690_v37, 0.0 }
 0x29a   : > { %965 = vmax.xlane.f32.xlu1 %v964_v55 }
 0x323   : > { %v966_v35 = vpop.xlane.xlu1 %965 }
 0x324   : > { %vm967_vm12 = vcmp.ge.f32.partialorder %v962_v52, %v966_v35  ;;  %vm968_vm13 = vcmp.ge.f32.partialorder %v963_v32, %v966_v35 }
 0x325   : > { %v1691_v36 = vsel %vm967_vm12, 1.0, %v2005_v3  ;;  %v1692_v57 = vsel %vm968_vm13, 1.0, %v2005_v3  ;;  %v975_v58 = vsel %vm967_vm12, -inf, %v962_v52  ;;  %v976_v9 = vsel %vm968_vm13, -inf, %v963_v32 }
 0x326   : > { %v973_v61 = vmax.f32 %v960_v56, %v1691_v36  ;;  %v974_v62 = vmax.f32 %v961_v21, %v1692_v57  ;;  %v977_v63 = vmax.f32 %v975_v58, %v976_v9 }
 0x328   : > { %978 = vmax.xlane.f32.xlu0 %v977_v63 }
 0x3b1   : > { %v979_v43 = vpop.xlane.xlu0 %978 }
 0x3b2   : > { %vm980_vm14 = vcmp.ge.f32.partialorder %v975_v58, %v979_v43  ;;  %vm981_vm15 = vcmp.ge.f32.partialorder %v976_v9, %v979_v43 }
 0x3b3   : > { %v1693_v1 = vsel %vm980_vm14, 1.0, %v2005_v3  ;;  %v1694_v5 = vsel %vm981_vm15, 1.0, %v2005_v3  ;;  %v988_v2 = vsel %vm980_vm14, -inf, %v975_v58  ;;  %v989_v13 = vsel %vm981_vm15, -inf, %v976_v9 }
 0x3b4   : > { %v986_v29 = vmax.f32 %v973_v61, %v1693_v1  ;;  %v987_v16 = vmax.f32 %v974_v62, %v1694_v5  ;;  %v990_v17 = vmax.f32 %v988_v2, %v989_v13 }
 0x3b6   : > { %991 = vmax.xlane.f32.xlu0 %v990_v17 }
 0x43f   : > { %v992_v60 = vpop.xlane.xlu0 %991 }
 0x440   : > { %vm993_vm0 = vcmp.ge.f32.partialorder %v988_v2, %v992_v60  ;;  %vm994_vm1 = vcmp.ge.f32.partialorder %v989_v13, %v992_v60 }
 0x441   : > { %v1695_v15 = vsel %vm993_vm0, 1.0, %v2005_v3  ;;  %v1696_v34 = vsel %vm994_vm1, 1.0, %v2005_v3  ;;  %v1001_v19 = vsel %vm993_vm0, -inf, %v988_v2  ;;  %v1002_v23 = vsel %vm994_vm1, -inf, %v989_v13 }
 0x442   : > { %v999_v12 = vmax.f32 %v986_v29, %v1695_v15  ;;  %v1000_v24 = vmax.f32 %v987_v16, %v1696_v34  ;;  %v1003_v38 = vmax.f32 %v1001_v19, %v1002_v23 }
 0x444   : > { %1004 = vmax.xlane.f32.xlu1 %v1003_v38 }
 0x4cd   : > { %v1005_v39 = vpop.xlane.xlu1 %1004 }
 0x4ce   : > { %vm1006_vm2 = vcmp.ge.f32.partialorder %v1001_v19, %v1005_v39  ;;  %vm1007_vm3 = vcmp.ge.f32.partialorder %v1002_v23, %v1005_v39 }
 0x4cf   : > { %v1697_v59 = vsel %vm1006_vm2, 1.0, %v2005_v3  ;;  %v1698_v28 = vsel %vm1007_vm3, 1.0, %v2005_v3  ;;  %v1014_v41 = vsel %vm1006_vm2, -inf, %v1001_v19  ;;  %v1015_v42 = vsel %vm1007_vm3, -inf, %v1002_v23 }
 0x4d0   : > { %v1012_v33 = vmax.f32 %v999_v12, %v1697_v59  ;;  %v1013_v44 = vmax.f32 %v1000_v24, %v1698_v28  ;;  %v1016_v20 = vmax.f32 %v1014_v41, %v1015_v42 }
 0x4d2   : > { %1017 = vmax.xlane.f32.xlu0 %v1016_v20 }
 0x55b   : > { %v1018_v53 = vpop.xlane.xlu0 %1017 }
 0x55c   : > { %vm1019_vm4 = vcmp.ge.f32.partialorder %v1014_v41, %v1018_v53  ;;  %vm1020_vm5 = vcmp.ge.f32.partialorder %v1015_v42, %v1018_v53 }
 0x55d   : > { %v1699_v14 = vsel %vm1019_vm4, 1.0, %v2005_v3  ;;  %v1700_v46 = vsel %vm1020_vm5, 1.0, %v2005_v3  ;;  %v1027_v25 = vsel %vm1019_vm4, -inf, %v1014_v41  ;;  %v1028_v7 = vsel %vm1020_vm5, -inf, %v1015_v42 }
 0x55e   : > { %v1025_v8 = vmax.f32 %v1012_v33, %v1699_v14  ;;  %v1026_v47 = vmax.f32 %v1013_v44, %v1700_v46  ;;  %v1029_v26 = vmax.f32 %v1027_v25, %v1028_v7  ;;  %v1136_v46 = vrot.slane %v2357_v18, 4 }
 0x560   : > { %1030 = vmax.xlane.f32.xlu1 %v1029_v26 }
 0x5e9   : > { %v1031_v48 = vpop.xlane.xlu1 %1030 }
 0x5ea   : > { %vm1032_vm6 = vcmp.ge.f32.partialorder %v1027_v25, %v1031_v48  ;;  %vm1033_vm7 = vcmp.ge.f32.partialorder %v1028_v7, %v1031_v48 }
 0x5eb   : > { %v1701_v51 = vsel %vm1032_vm6, 1.0, %v2005_v3  ;;  %v1702_v30 = vsel %vm1033_vm7, 1.0, %v2005_v3  ;;  %v1040_v11 = vsel %vm1032_vm6, -inf, %v1027_v25  ;;  %v1041_v50 = vsel %vm1033_vm7, -inf, %v1028_v7 }
 0x5ec   : > { %v1038_v6 = vmax.f32 %v1025_v8, %v1701_v51  ;;  %v1039_v4 = vmax.f32 %v1026_v47, %v1702_v30  ;;  %v1042_v52 = vmax.f32 %v1040_v11, %v1041_v50  ;;  %v1142_v25 = vrot.slane %v2362_v45, 4 }
 0x5ed   : > { %v1137_v7 = vmax.f32 %v2357_v18, %v1136_v46 }
 0x5ee   : > { %1043 = vmax.xlane.f32.xlu0 %v1042_v52  ;;  %v1143_v8 = vmax.f32 %v2362_v45, %v1142_v25 }
 0x5ef   : > { %v1138_v47 = vrot.slane %v1137_v7, 2 }
 0x5f0   : > { %v1144_v26 = vrot.slane %v1143_v8, 2 }
 0x5f1   : > { %v1139_v48 = vmax.f32 %v1137_v7, %v1138_v47 }
 0x5f2   : > { %v1145_v51 = vmax.f32 %v1143_v8, %v1144_v26 }
 0x5f3   : > { %v1140_v30 = vrot.slane %v1139_v48, 1 }
 0x677   : > { %v1044_v32 = vpop.xlane.xlu0 %1043 }
 0x678   : > { %vm1045_vm8 = vcmp.ge.f32.partialorder %v1040_v11, %v1044_v32  ;;  %vm1046_vm9 = vcmp.ge.f32.partialorder %v1041_v50, %v1044_v32 }
 0x679   : > { %v1703_v55 = vsel %vm1045_vm8, 1.0, %v2005_v3  ;;  %v1704_v54 = vsel %vm1046_vm9, 1.0, %v2005_v3  ;;  %v1053_v37 = vsel %vm1045_vm8, -inf, %v1040_v11  ;;  %v1054_v35 = vsel %vm1046_vm9, -inf, %v1041_v50 }
 0x67a   : > { %v1051_v56 = vmax.f32 %v1038_v6, %v1703_v55  ;;  %v1052_v21 = vmax.f32 %v1039_v4, %v1704_v54  ;;  %v1055_v36 = vmax.f32 %v1053_v37, %v1054_v35  ;;  %v1146_v11 = vrot.slane %v1145_v51, 1 }
 0x67b   : > { %v1141_v50 = vmax.f32 %v1139_v48, %v1140_v30 }
 0x67c   : > { %1056 = vmax.xlane.f32.xlu1 %v1055_v36  ;;  %v1147_v6 = vmax.f32 %v1145_v51, %v1146_v11 }
 0x67d   : > { %vm1148_vm2 = vcmp.ge.f32.partialorder %v2357_v18, %v1141_v50 }
 0x67e   : > { %vm1149_vm3 = vcmp.ge.f32.partialorder %v2362_v45, %v1147_v6  ;;  %v1150_v4 = vsel %vm1148_vm2, %v2211_v0, 8 }
 0x67f   : > { %v1151_v52 = vsel %vm1149_vm3, %v2211_v0, 8  ;;  %v1152_v32 = vrot.slane %v1150_v4, 4 }
 0x680   : > { %v1161_v55 = vrot.slane %v1151_v52, 4 }
 0x681   : > { %vm1153_vm4 = vcmp.lt.s32.totalorder %v1150_v4, %v1152_v32 }
 0x682   : > { %vm1162_vm5 = vcmp.lt.s32.totalorder %v1151_v52, %v1161_v55  ;;  %v1154_v54 = vsel %vm1153_vm4, %v1150_v4, %v1152_v32  ;;  %vm1414_vm4 = vcmp.lt.s32.totalorder %v460_v10, 256 }
 0x705   : > { %v1057_v57 = vpop.xlane.xlu1 %1056 }
 0x706   : > { %vm1058_vm10 = vcmp.ge.f32.partialorder %v1053_v37, %v1057_v57  ;;  %vm1059_vm11 = vcmp.ge.f32.partialorder %v1054_v35, %v1057_v57 }
 0x707   : > { %v1705_v58 = vsel %vm1058_vm10, 1.0, %v2005_v3  ;;  %v1706_v9 = vsel %vm1059_vm11, 1.0, %v2005_v3  ;;  %v1066_v61 = vsel %vm1058_vm10, -inf, %v1053_v37  ;;  %v1067_v62 = vsel %vm1059_vm11, -inf, %v1054_v35 }
 0x708   : > { %v1064_v63 = vmax.f32 %v1051_v56, %v1705_v58  ;;  %v1065_v43 = vmax.f32 %v1052_v21, %v1706_v9  ;;  %v1068_v1 = vmax.f32 %v1066_v61, %v1067_v62  ;;  %v1163_v37 = vsel %vm1162_vm5, %v1151_v52, %v1161_v55 }
 0x709   : > { %v1155_v35 = vrot.slane %v1154_v54, 2  ;;  %v1164_v56 = vrot.slane %v1163_v37, 2 }
 0x70a   : > { %1069 = vmax.xlane.f32.xlu0 %v1068_v1 }
 0x70b   : > { %vm1156_vm8 = vcmp.lt.s32.totalorder %v1154_v54, %v1155_v35  ;;  %vm1165_vm9 = vcmp.lt.s32.totalorder %v1163_v37, %v1164_v56 }
 0x793   : > { %v1070_v5 = vpop.xlane.xlu0 %1069 }
 0x794   : > { %vm1071_vm12 = vcmp.ge.f32.partialorder %v1066_v61, %v1070_v5  ;;  %vm1072_vm13 = vcmp.ge.f32.partialorder %v1067_v62, %v1070_v5 }
 0x795   : > { %v1707_v2 = vsel %vm1071_vm12, 1.0, %v2005_v3  ;;  %v1708_v13 = vsel %vm1072_vm13, 1.0, %v2005_v3  ;;  %v1079_v29 = vsel %vm1071_vm12, -inf, %v1066_v61  ;;  %v1080_v16 = vsel %vm1072_vm13, -inf, %v1067_v62 }
 0x796   : > { %v1077_v17 = vmax.f32 %v1064_v63, %v1707_v2  ;;  %v1078_v60 = vmax.f32 %v1065_v43, %v1708_v13  ;;  %v1081_v15 = vmax.f32 %v1079_v29, %v1080_v16  ;;  %v1157_v61 = vsel %vm1156_vm8, %v1154_v54, %v1155_v35 }
 0x797   : > { %v1166_v62 = vsel %vm1165_vm9, %v1163_v37, %v1164_v56  ;;  %v1158_v2 = vrot.slane %v1157_v61, 1 }
 0x798   : > { %1082 = vmax.xlane.f32.xlu1 %v1081_v15  ;;  %v1167_v13 = vrot.slane %v1166_v62, 1 }
 0x799   : > { %vm1159_vm10 = vcmp.lt.s32.totalorder %v1157_v61, %v1158_v2 }
 0x79a   : > { %vm1168_vm11 = vcmp.lt.s32.totalorder %v1166_v62, %v1167_v13 }
 0x821   : > { %v1083_v34 = vpop.xlane.xlu1 %1082 }
 0x822   : > { %vm1084_vm14 = vcmp.ge.f32.partialorder %v1079_v29, %v1083_v34  ;;  %vm1085_vm15 = vcmp.ge.f32.partialorder %v1080_v16, %v1083_v34 }
 0x823   : > { %v1709_v19 = vsel %vm1084_vm14, 1.0, %v2005_v3  ;;  %v1710_v23 = vsel %vm1085_vm15, 1.0, %v2005_v3  ;;  %v1092_v12 = vsel %vm1084_vm14, -inf, %v1079_v29  ;;  %v1093_v24 = vsel %vm1085_vm15, -inf, %v1080_v16 }
 0x824   : > { %v1090_v38 = vmax.f32 %v1077_v17, %v1709_v19  ;;  %v1091_v39 = vmax.f32 %v1078_v60, %v1710_v23  ;;  %v1094_v59 = vmax.f32 %v1092_v12, %v1093_v24  ;;  %v1160_v19 = vsel %vm1159_vm10, %v1157_v61, %v1158_v2 }
 0x825   : > { %v1169_v23 = vsel %vm1168_vm11, %v1166_v62, %v1167_v13  ;;  %vm1170_vm12 = vcmp.eq.s32.totalorder %v2211_v0, %v1160_v19  ;;  %vm1314_vm11 = vcmask 64512  }
 0x826   : > { %1095 = vmax.xlane.f32.xlu0 %v1094_v59  ;;  %vm1171_vm13 = vcmp.eq.s32.totalorder %v2211_v0, %v1169_v23  ;;  %v457_v23 = vld [vmem:[%s445_s29] sm:$0xf]  ;;  %s1884_s29 = sshll.u32 %s2012_s14, 4  ;;  %s1885_s29 = int_to_ptr.vmem [resolvable:$false] %s1884_s29 }
 0x827   : > { %v1716_v59 = vsel %vm1171_vm13, 1.0, %v2005_v3 }
 0x8af   : > { %v1096_v28 = vpop.xlane.xlu0 %1095 }
 0x8b0   : > { %vm1097_vm0 = vcmp.ge.f32.partialorder %v1092_v12, %v1096_v28  ;;  %vm1098_vm1 = vcmp.ge.f32.partialorder %v1093_v24, %v1096_v28 }
 0x8b1   : > { %v1711_v41 = vsel %vm1097_vm0, 1.0, %v2005_v3  ;;  %v1712_v42 = vsel %vm1098_vm1, 1.0, %v2005_v3  ;;  %v1105_v33 = vsel %vm1097_vm0, -inf, %v1092_v12  ;;  %v1106_v44 = vsel %vm1098_vm1, -inf, %v1093_v24 }
 0x8b2   : > { %v1103_v20 = vmax.f32 %v1090_v38, %v1711_v41  ;;  %v1104_v53 = vmax.f32 %v1091_v39, %v1712_v42  ;;  %v1107_v14 = vmax.f32 %v1105_v33, %v1106_v44  ;;  %v1715_v39 = vsel %vm1170_vm12, 1.0, %v2005_v3 }
 0x8b4   : > { %1108 = vmax.xlane.f32.xlu1 %v1107_v14 }
 0x93d   : > { %v1109_v21 = vpop.xlane.xlu1 %1108 }
 0x93e   : > { %vm1110_vm6 = vcmp.ge.f32.partialorder %v1105_v33, %v1109_v21  ;;  %vm1111_vm7 = vcmp.ge.f32.partialorder %v1106_v44, %v1109_v21 }
 0x93f   : > { %v1713_v36 = vsel %vm1110_vm6, 1.0, %v2005_v3  ;;  %v1714_v57 = vsel %vm1111_vm7, 1.0, %v2005_v3 }
 0x940   : > { %v1116_v58 = vmax.f32 %v1103_v20, %v1713_v36  ;;  %v1117_v9 = vmax.f32 %v1104_v53, %v1714_v57 }
 0x942   : > { %v1118_v63 = vmul.f32 %v2345_v27, %v1116_v58  ;;  %v1119_v43 = vmul.f32 %v2350_v40, %v1117_v9 }
 0x944   : > { %v1120_v1 = vmul.f32 %v1118_v63, %v2342_v22  ;;  %v1121_v5 = vmul.f32 %v1119_v43, %v2342_v22 }
 0x946   : > { %v1124_v29 = vrot.slane %v1120_v1, 4  ;;  %v1130_v16 = vrot.slane %v1121_v5, 4 }
 0x948   : > { %v1125_v17 = vadd.f32 %v1124_v29, %v1120_v1  ;;  %v1131_v60 = vadd.f32 %v1130_v16, %v1121_v5  ;;  %v1853_v29 = vld [vmem:[%s2153_s23] sm:$0xff]  ;;  %s409_s23 = scalar_lea.vmem [#allocation5], %s1670_s27  ;;  %s1886_s27 = scalar_lea.vmem %s1885_s29, 1024 }
 0x949   : > { %v1263_v16 = vcvt.s32.f32 %v1853_v29  ;;  %s1441_s16 = sshll.u32 %s409_s23, 4  ;;  %s2467_s16 = int_to_ptr.vmem [resolvable:$true] %s1441_s16 }
 0x94a   : > { %v1126_v15 = vrot.slane %v1125_v17, 2  ;;  %v1132_v34 = vrot.slane %v1131_v60, 2  ;;  %s1880_s2 = scalar_lea.vmem %s2467_s16, 512  ;;  %p1887_p11 = scmp.lt.s32.totalorder %s2467_s16, %s1885_s29 }
 0x94b   : > { %p1881_p6 = scmp.ne.s32.totalorder %s2467_s16, %s1880_s2  ;;  %p1888_p12 = scmp.lt.s32.totalorder %s1886_s27, %s1880_s2 }
 0x94c   : > { %v1127_v12 = vadd.f32 %v1126_v15, %v1125_v17  ;;  %v1133_v27 = vadd.f32 %v1132_v34, %v1131_v60 }
 0x94d   : > { %p1882_p9 = pnand %p1881_p6, %p2107_p5  ;;  %p1889_p13 = por %p1888_p12, %p1887_p11 }
 0x94e   : > { %v1128_v24 = vrot.slane %v1127_v12, 1  ;;  %v1134_v40 = vrot.slane %v1133_v27, 1 }
 0x94f   : > { %p1883_p10 = pneg %p1882_p9 }
 0x950   : > { %v1129_v22 = vadd.f32 %v1128_v24, %v1127_v12  ;;  %v1135_v38 = vadd.f32 %v1134_v40, %v1133_v27  ;;  %v2011_v12 = vmov 1.0  }
 0x951   : > { %p1890_p0 = pnand %p1889_p13, %p1883_p10 }
 0x952   : > { %vm1176_vm14 = vcmp.gt.f32.partialorder %v1129_v22, 1.0  ;;  %vm1177_vm15 = vcmp.gt.f32.partialorder %v1135_v38, 1.0 }
 0x953   : > { %v1182_v28 = vsel %vm1176_vm14, %v1715_v39, %v1120_v1  ;;  %v1183_v41 = vsel %vm1177_vm15, %v1716_v59, %v1121_v5 }
 0x954   : > { %v1241_v42 = vmul.f32 %v1182_v28, %v2357_v18  ;;  %v1242_v33 = vmul.f32 %v1183_v41, %v2362_v45  ;;  %v2419_v44 = vmul.f32 %v1182_v28, %v2368_v49  ;;  %v2422_v20 = vmul.f32 %v1183_v41, %v2370_v31 }
 0x955   : > { %v1190_v53 = vrot.slane %v1183_v41, 4  ;;  %v1184_v14 = vrot.slane %v1182_v28, 4  ;;  %v2010_v18 = vmov 1966171168  }
 0x956   : > { %v1243_v46 = vmax.f32 %v1241_v42, %v1242_v33  ;;  %v1238_v25 = vmax.f32 %v2419_v44, %v2422_v20  ;;  %v1398_v45 = vunpack.c.l.s4 %v2010_v18 }
 0x957   : > { %v1191_v7 = vadd.f32 %v1190_v53, %v1183_v41  ;;  %v1203_v8 = vmax.f32 %v1183_v41, %v1190_v53  ;;  %v1185_v47 = vadd.f32 %v1184_v14, %v1182_v28  ;;  %v1197_v26 = vmax.f32 %v1182_v28, %v1184_v14 }
 0x958   : > { %1244 = vmax.xlane.f32.xlu1 %v1243_v46  ;;  %1239 = vmax.xlane.f32.xlu0 %v1238_v25  ;;  %v1399_v4 = vunpack.c.0.s8 %v1398_v45 }
 0x959   : > { %v1192_v48 = vrot.slane %v1191_v7, 2  ;;  %v1204_v49 = vrot.slane %v1203_v8, 2  ;;  %v1198_v51 = vrot.slane %v1197_v26, 2  ;;  %v1186_v31 = vrot.slane %v1185_v47, 2 }
 0x95a   : > { %v1402_v36 = vsub.s32 %v1399_v4, %v2211_v0 }
 0x95b   : > { %v1205_v30 = vmax.f32 %v1203_v8, %v1204_v49  ;;  %v1199_v11 = vmax.f32 %v1197_v26, %v1198_v51  ;;  %v1193_v50 = vadd.f32 %v1192_v48, %v1191_v7  ;;  %v1187_v6 = vadd.f32 %v1186_v31, %v1185_v47 }
 0x95d   : > { %v1206_v52 = vrot.slane %v1205_v30, 1  ;;  %v1200_v32 = vrot.slane %v1199_v11, 1  ;;  %v1194_v55 = vrot.slane %v1193_v50, 1  ;;  %v1188_v54 = vrot.slane %v1187_v6, 1 }
 0x95f   : > { %v1207_v37 = vmax.f32 %v1205_v30, %v1206_v52  ;;  %v1201_v35 = vmax.f32 %v1199_v11, %v1200_v32  ;;  %v2426_v56 = vadd.f32 %v1194_v55, %v1193_v50  ;;  %v2428_v21 = vadd.f32 %v1188_v54, %v1187_v6 }
 0x961   : > { %vm1209_vm0 = vcmp.ge.f32.partialorder %v1183_v41, %v1207_v37  ;;  %vm1208_vm1 = vcmp.ge.f32.partialorder %v1182_v28, %v1201_v35  ;;  %v1396_v62 = vcombine.low %v2428_v21, %v2426_v56  ;;  %vm1299_vm12 = vcmp.gt.f32.partialorder %v2426_v56, 0.0 }
 0x962   : > { %v1211_v57 = vsel %vm1209_vm0, %v2211_v0, 8  ;;  %v1210_v58 = vsel %vm1208_vm1, %v2211_v0, 8  ;;  %vm1298_vm13 = vcmp.gt.f32.partialorder %v2428_v21, 0.0 }
 0x963   : > { %v1221_v9 = vrot.slane %v1211_v57, 4  ;;  %v1212_v61 = vrot.slane %v1210_v58, 4  ;;  %v1403_v63 = vrot.slane %v1396_v62, %v1402_v36 }
 0x965   : > { %vm1222_vm2 = vcmp.lt.s32.totalorder %v1211_v57, %v1221_v9  ;;  %vm1213_vm3 = vcmp.lt.s32.totalorder %v1210_v58, %v1212_v61  ;;  %v1410_v13 = vrot.slane %v1403_v63, %v1402_v36 }
 0x966   : > { %v1223_v43 = vsel %vm1222_vm2, %v1211_v57, %v1221_v9  ;;  %v1214_v1 = vsel %vm1213_vm3, %v1210_v58, %v1212_v61  ;;  %v1724_v9 = vsel %vm1299_vm12, 1.0, %v2005_v3  ;;  %v1723_v61 = vsel %vm1298_vm13, 1.0, %v2005_v3 }
 0x967   : > { %v1224_v5 = vrot.slane %v1223_v43, 2  ;;  %v1215_v2 = vrot.slane %v1214_v1, 2  ;;  %1416 = vst.msk [vmem:[%s2441_s26] sm:$0x3] %vm1414_vm4, %v1410_v13 }
 0x969   : > { %vm1225_vm5 = vcmp.lt.s32.totalorder %v1223_v43, %v1224_v5  ;;  %vm1216_vm6 = vcmp.lt.s32.totalorder %v1214_v1, %v1215_v2 }
 0x96a   : > { %v1226_v17 = vsel %vm1225_vm5, %v1223_v43, %v1224_v5  ;;  %v1217_v60 = vsel %vm1216_vm6, %v1214_v1, %v1215_v2 }
 0x96b   : > { %v1227_v15 = vrot.slane %v1226_v17, 1  ;;  %v1218_v34 = vrot.slane %v1217_v60, 1 }
 0x96d   : > { %vm1228_vm7 = vcmp.lt.s32.totalorder %v1226_v17, %v1227_v15  ;;  %vm1219_vm8 = vcmp.lt.s32.totalorder %v1217_v60, %v1218_v34 }
 0x96e   : > { %1266 = vperm.xlu0 %1827, %v1263_v16   ;;  %v1229_v10 = vsel %vm1228_vm7, %v1226_v17, %v1227_v15  ;;  %v1220_v19 = vsel %vm1219_vm8, %v1217_v60, %v1218_v34 }
 0x96f   : > { %vm1231_vm9 = vcmp.eq.s32.totalorder %v2211_v0, %v1229_v10  ;;  %vm1230_vm10 = vcmp.eq.s32.totalorder %v2211_v0, %v1220_v19 }
 0x970   : > { %1725 = vmatprep.subr.msk.mxu1 %vm1231_vm9, %v2011_v12  ;;  %v1718_v40 = vsel %vm1231_vm9, 1.0, %v2005_v3  ;;  %v1717_v38 = vsel %vm1230_vm10, 1.0, %v2005_v3 }
 0x971   : > { %1726 = vmatpush1.msk.msra.mxu1 %vm1230_vm10, %v2011_v12 }
 0x972   : > { %1727 = vmatmul.mubr.msk.f32.vlgmr.msra.gmra.mxu1 %vm1314_vm11, %v457_v23 }
 0x9e1   : > { %v1240_v27 = vpop.xlane.xlu0 %1239  ;;  %v1245_v25 = vpop.xlane.xlu1 %1244 }
 0x9e2   : > { %v1246_v24 = vadd.f32 1e-09, %v1240_v27 }
 0x9e4   : > { %1851 = vrcp.f32 %v1246_v24 }
 0x9e9   : > { %v1267_v22 = vpop.permute.xlu0 %1266 }
 0x9ea   : > { %v1269_v39 = vmul.f32 %v1717_v38, %v1267_v22  ;;  %v1270_v59 = vmul.f32 %v1718_v40, %v1267_v22 }
 0x9ec   : > { %v1271_v28 = vrot.slane %v1269_v39, 4  ;;  %v1277_v41 = vrot.slane %v1270_v59, 4 }
 0x9ee   : > { %v1272_v42 = vadd.f32 %v1271_v28, %v1269_v39  ;;  %v1278_v33 = vadd.f32 %v1277_v41, %v1270_v59 }
 0x9f0   : > { %v1273_v53 = vrot.slane %v1272_v42, 2  ;;  %v1279_v14 = vrot.slane %v1278_v33, 2 }
 0x9f1   : > { %v1852_v46 = vpop.eup %1851 }
 0x9f2   : > { %v1248_v7 = vmul.f32 %v1852_v46, %v1245_v25  ;;  %v1274_v8 = vadd.f32 %v1273_v53, %v1272_v42  ;;  %v1280_v47 = vadd.f32 %v1279_v14, %v1278_v33 }
 0x9f4   : > { %v1249_v26 = vmul.f32 %v1248_v7, %v2419_v44  ;;  %v1250_v18 = vmul.f32 %v1248_v7, %v2422_v20  ;;  %v1275_v45 = vrot.slane %v1274_v8, 1  ;;  %v1281_v48 = vrot.slane %v1280_v47, 1 }
 0x9f5   : > { %v1285_v20 = vadd.s32 8, %v2211_v0 }
 0x9f6   : > { %v1251_v49 = vrot.slane %v1249_v26, 4  ;;  %v1257_v51 = vrot.slane %v1250_v18, 4  ;;  %v1276_v31 = vadd.f32 %v1275_v45, %v1274_v8  ;;  %v1282_v30 = vadd.f32 %v1281_v48, %v1280_v47 }
 0x9f8   : > { %v1252_v11 = vmax.f32 %v1249_v26, %v1251_v49  ;;  %v1258_v50 = vmax.f32 %v1250_v18, %v1257_v51  ;;  %v1744_v6 = vtrunc.f32 %v1276_v31  ;;  %v1746_v4 = vtrunc.f32 %v1282_v30 }
 0x9fa   : > { %v1253_v52 = vrot.slane %v1252_v11, 2  ;;  %v1259_v32 = vrot.slane %v1258_v50, 2  ;;  %v1745_v55 = vcvt.f32.s32 %v1744_v6  ;;  %v1747_v54 = vcvt.f32.s32 %v1746_v4 }
 0x9fc   : > { %v1254_v37 = vmax.f32 %v1252_v11, %v1253_v52  ;;  %v1260_v44 = vmax.f32 %v1258_v50, %v1259_v32  ;;  %vm1286_vm14 = vcmp.eq.s32.totalorder %v2211_v0, %v1745_v55  ;;  %vm1287_vm15 = vcmp.eq.s32.totalorder %v2211_v0, %v1747_v54 }
 0x9fd   : > { %vm1288_vm0 = vcmp.eq.s32.totalorder %v1285_v20, %v1745_v55  ;;  %vm1289_vm1 = vcmp.eq.s32.totalorder %v1285_v20, %v1747_v54  ;;  %v1719_v21 = vsel %vm1286_vm14, 1.0, %v2005_v3  ;;  %v1720_v63 = vsel %vm1287_vm15, 1.0, %v2005_v3 }
 0x9fe   : > { %v1255_v35 = vrot.slane %v1254_v37, 1  ;;  %v1261_v36 = vrot.slane %v1260_v44, 1  ;;  %v1721_v0 = vsel %vm1288_vm0, 1.0, %v2005_v3  ;;  %v1722_v43 = vsel %vm1289_vm1, 1.0, %v2005_v3 }
 0xa00   : > { %v1256_v57 = vmax.f32 %v1254_v37, %v1255_v35  ;;  %v1262_v58 = vmax.f32 %v1260_v44, %v1261_v36 }
 0xa02   : > { %v1305_v62 = vmul.f32 %v1724_v9, %v1262_v58  ;;  %v1304_v56 = vmul.f32 %v1723_v61, %v1256_v57 }
 0xa04   : > { %v1306_v1 = vmul.f32 %v1719_v21, %v1304_v56  ;;  %v1307_v5 = vmul.f32 %v1720_v63, %v1305_v62  ;;  %v1308_v2 = vmul.f32 %v1721_v0, %v1304_v56  ;;  %v1309_v13 = vmul.f32 %v1722_v43, %v1305_v62 }
 0xa06   : > { %1310 = vst [vmem:[%s409_s23] sm:$0xff] %v1306_v1  ;;  %1311 = vst [vmem:[%s409_s23 + $0x8] sm:$0xff] %v1307_v5 }
 0xa07   : > { %1312 = vst [vmem:[%s409_s23 + $0x10] sm:$0xff] %v1308_v2  ;;  %1313 = vst [vmem:[%s409_s23 + $0x18] sm:$0xff] %v1309_v13 }
 0xa08   : > { %1893 = shalt.err (!%p1890_p0)
}
 0xa09   : > { %s1894_s23 = scalar_lea.hbm %s2472_s24, 512  ;;  %s1898_s22 = scalar_lea.hbm %s2586_s7, 1024 }
 0xa0a   : > { %p1895_p1 = scmp.ne.s32.totalorder %s2472_s24, %s1894_s23  ;;  %p1899_p4 = scmp.lt.s32.totalorder %s2472_s24, %s2586_s7 }
 0xa0b   : > { %p1900_p7 = scmp.lt.s32.totalorder %s1898_s22, %s1894_s23 }
 0xa0c   : > { %p1896_p2 = pnand %p1895_p1, %p2107_p5 }
 0xa0d   : > { %p1901_p8 = por %p1900_p7, %p1899_p4 }
 0xa0e   : > { %p1897_p3 = pneg %p1896_p2 }
 0xa10   : > { %p1902_p6 = pnand %p1901_p8, %p1897_p3 }
 0xa12   : > { %1905 = shalt.err (!%p1902_p6)
}
 0xa13   : > { %s2013_s2 = smov 256   ;;  %s2014_s29 = smov 16  }
 0xa14   : > { %s2605_s27 = scalar_lea.sflag [#allocation4], %s2431_s28  ;;  %s1671_s25 = sshll.u32 %s2431_s28, 3 }
 0xa15   : > { %1752 = dma.vmem_to_hbm [thread:$0]  (%p2107_p5), %s2467_s16, 512, %s2472_s24, %s2605_s27, %s2013_s2, %s2013_s2, %s2014_s29  }
 0xa16   : > { %s1422_s17 = sand.u32 1, %s2088_s13   ;;  %s1742_s23 = sshll.u32 %s2088_s13, 7 }
 0xa17   : > { %s416_s21 = scalar_lea.vmem [#allocation6], %s1671_s25  ;;  %s1743_s14 = sshll.u32 %s2088_s13, 5 }
 0xa18   : > { %s1458_s22 = sshll.u32 %s416_s21, 4  ;;  %s1472_s0 = sshll.u32 %s2441_s26, 4  ;;  %s2507_s22 = int_to_ptr.vmem [resolvable:$true] %s1458_s22  ;;  %s2514_s0 = int_to_ptr.vmem [resolvable:$true] %s1472_s0 }
 0xa19   : > { %s2505_s4 = scalar_lea.hbm %s2587_s8, %s1742_s23  ;;  %s2512_s28 = scalar_lea.hbm %s2588_s9, %s1743_s14 }
 0xa1a   : > { %s2516_s13 = scalar_lea.sflag [#allocation7], %s1422_s17  ;;  %s1906_s26 = scalar_lea.vmem %s2507_s22, 128 }
 0xa1b   : > { %p1907_p9 = scmp.ne.s32.totalorder %s2507_s22, %s1906_s26  ;;  %s2015_s1 = smov [#allocation6]  }
 0xa1c   : > { %s1910_s3 = sshll.u32 %s2015_s1, 4  ;;  %s1911_s3 = int_to_ptr.vmem [resolvable:$false] %s1910_s3 }
 0xa1d   : > { %p1908_p10 = pnand %p1907_p9, %p2107_p5  ;;  %s1912_s24 = scalar_lea.vmem %s1911_s3, 256 }
 0xa1e   : > { %p1913_p12 = scmp.lt.s32.totalorder %s2507_s22, %s1911_s3  ;;  %p1914_p13 = scmp.lt.s32.totalorder %s1912_s24, %s1906_s26 }
 0xa1f   : > { %p1909_p11 = pneg %p1908_p10 }
 0xa20   : > { %p1915_p0 = por %p1914_p13, %p1913_p12 }
 0xa22   : > { %p1916_p1 = pnand %p1915_p0, %p1909_p11 }
 0xa32   : > { %v1384_v3 = vpop.f32.mrf.mxu1 }
 0xa34   : > { %v1386_v29 = vpop.f32.mrf.mxu1 }
 0xa35   : > { %v1391_v16 = vcombine.low %v1384_v3, %v1386_v29 }
 0xa37   : > { %1393 = vst [vmem:[%s416_s21] sm:$0xff] %v1391_v16 }
 0xa38   : > { %1919 = shalt.err (!%p1916_p1)
}
 0xa39   : > { %s1920_s5 = scalar_lea.hbm %s2505_s4, 128  ;;  %s1924_s27 = scalar_lea.hbm %s2587_s8, 256 }
 0xa3a   : > { %p1921_p2 = scmp.ne.s32.totalorder %s2505_s4, %s1920_s5  ;;  %p1925_p7 = scmp.lt.s32.totalorder %s2505_s4, %s2587_s8 }
 0xa3b   : > { %p1926_p8 = scmp.lt.s32.totalorder %s1924_s27, %s1920_s5 }
 0xa3c   : > { %p1922_p3 = pnand %p1921_p2, %p2107_p5 }
 0xa3d   : > { %p1927_p6 = por %p1926_p8, %p1925_p7 }
 0xa3e   : > { %p1923_p4 = pneg %p1922_p3 }
 0xa40   : > { %p1928_p9 = pnand %p1927_p6, %p1923_p4 }
 0xa42   : > { %1931 = shalt.err (!%p1928_p9)
}
 0xa43   : > { %1753 = dma.vmem_to_hbm [thread:$0]  (%p2107_p5), %s2507_s22, 128, %s2505_s4, %s2516_s13  }
 0xa44   : > { %s1932_s23 = scalar_lea.vmem %s2514_s0, 32  ;;  %s2016_s21 = smov [#allocation8]  }
 0xa45   : > { %p1933_p10 = scmp.ne.s32.totalorder %s2514_s0, %s1932_s23  ;;  %s1936_s14 = sshll.u32 %s2016_s21, 4  ;;  %s1937_s14 = int_to_ptr.vmem [resolvable:$false] %s1936_s14 }
 0xa46   : > { %s1938_s16 = scalar_lea.vmem %s1937_s14, 64  ;;  %p1939_p13 = scmp.lt.s32.totalorder %s2514_s0, %s1937_s14 }
 0xa47   : > { %p1934_p11 = pnand %p1933_p10, %p2107_p5  ;;  %p1940_p0 = scmp.lt.s32.totalorder %s1938_s16, %s1932_s23 }
 0xa49   : > { %p1935_p12 = pneg %p1934_p11  ;;  %p1941_p1 = por %p1940_p0, %p1939_p13 }
 0xa4b   : > { %p1942_p2 = pnand %p1941_p1, %p1935_p12 }
 0xa4d   : > { %1945 = shalt.err (!%p1942_p2)
}
 0xa4e   : > { %s1946_s26 = scalar_lea.hbm %s2512_s28, 32  ;;  %s1950_s1 = scalar_lea.hbm %s2588_s9, 64 }
 0xa4f   : > { %p1947_p3 = scmp.ne.s32.totalorder %s2512_s28, %s1946_s26  ;;  %p1951_p8 = scmp.lt.s32.totalorder %s2512_s28, %s2588_s9 }
 0xa50   : > { %p1952_p6 = scmp.lt.s32.totalorder %s1950_s1, %s1946_s26 }
 0xa51   : > { %p1948_p4 = pnand %p1947_p3, %p2107_p5 }
 0xa52   : > { %p1953_p9 = por %p1952_p6, %p1951_p8 }
 0xa53   : > { %p1949_p7 = pneg %p1948_p4 }
 0xa55   : > { %p1954_p10 = pnand %p1953_p9, %p1949_p7 }
 0xa57   : > { %1957 = shalt.err (!%p1954_p10)
}
 0xa58   : > { %1754 = dma.vmem_to_hbm [thread:$0]  (%p2107_p5), %s2514_s0, 32, %s2512_s28, %s2516_s13  }
 0xa59 PF: > { %p1774_p11 = scmp.ge.s32.totalorder %s2000_s12, 2  ;;  %s1484_s5 = sand.u32 1, %s1988_s30  }
 0xa5a   : > { %p2606_p12 = scmp.ne.s32.totalorder %s2597_s20, 0  ;;  %s1485_s2 = scalar_lea.sflag [#allocation4], %s1484_s5 }
 0xa5c   : > { %p1763_p13 = pnand %p1774_p11, %p2606_p12 }
 0xa5e   : > { %p1764_p0 = pneg %p1763_p13 }
 0xa60   : > { %1979 = dma.done.wait (%p1764_p0), %s1485_s2, 512  }
 0xa61   : > { %1981 = vsyncadd (%p1764_p0), %s1485_s2, 4294966784  ;;  %s2607_s29 = sadd.s32 4294967294, %s2000_s12  }
 0xa62   : > { %s1493_s27 = sand.u32 1, %s2607_s29  }
 0xa63   : > { %s1494_s19 = scalar_lea.sflag [#allocation7], %s1493_s27 }
 0xa64   : > { %1983 = dma.done.wait (%p1764_p0), %s1494_s19, 160  }
 0xa65   : > { %1985 = vsyncadd (%p1764_p0), %s1494_s19, 4294967136  ;;  %p24_p5 = scmp.ge.s32.totalorder %s2092_s15, 4   ;;  %s2608_s30 = smov %s1992_s10 }
 0xa66   : > { %s2609_s10 = smov %s1996_s11  ;;  %s2610_s11 = smov %s2105_s18 }
 0xa67   : > { %s2611_s12 = smov %s2092_s15  ;;  %26 = sbr.rel (!%p24_p5) target bundleno = 13 (0xd), region = 135 }
 0xa6c   :  { %1508 = vsyncpa [#allocation3], 1 }
 0xa6d   :  { %1510 = vsyncpa [#allocation3 + $0x1], 1 }
 0xa6e   :  { %1511 = vsyncpa [#allocation4], 1 }
 0xa6f   :  { %1513 = vsyncpa [#allocation4 + $0x1], 1 }
 0xa70   :  { %1514 = vsyncpa [#allocation7], 1 }
 0xa71   :  { %1516 = vsyncpa [#allocation7 + $0x1], 1 }

</bundles_post_ra>
